<compile_context>
chip_gen: v6e
topology: v6e:2x2x1
jax: 0.10.0
libtpu: 0.0.40
codegen_flags: <defaults>
</compile_context>

<pallas_src>
import functools

import jax
import jax.numpy as jnp
from jax.experimental import pallas as pl
from jax.experimental.pallas import tpu as pltpu

BN_EPS = 1e-5
ACT_DTYPE = jnp.bfloat16


def _round_up(x, m):
    return (x + m - 1) // m * m


def _vmem_limit_bytes():
    # Generation-aware scoped-VMEM limit (v5e/v6e: 128 MiB phys, v7x: 64 MiB/TC).
    try:
        cap = int(getattr(pltpu.get_tpu_info(), "vmem_capacity_bytes", 0))
        if cap > 0:
            return max(48 * 1024 * 1024,
                       min(cap - 8 * 1024 * 1024, 100 * 1024 * 1024))
    except Exception:
        pass
    return 48 * 1024 * 1024


VMEM_LIMIT = _vmem_limit_bytes()
VMEM_BUDGET = int(VMEM_LIMIT * 0.85)   # headroom for double-buffered tiles


def _pick_tile(dim, prefs):
    for t in prefs:
        if dim >= t and dim % t == 0:
            return t
    return dim  # small / ragged dim -> one full block


# ----------------------------------------------------------------------------
# Generic GEMM (+bias, +residual, +ReLU) kernel
# ----------------------------------------------------------------------------
def _matmul_kernel(*refs, relu, has_res):
    if has_res:
        a_ref, b_ref, bias_ref, res_ref, o_ref, acc_ref = refs
    else:
        a_ref, b_ref, bias_ref, o_ref, acc_ref = refs
        res_ref = None

    @pl.when(pl.program_id(2) == 0)
    def _():
        acc_ref[...] = jnp.zeros_like(acc_ref)

    acc_ref[...] += jnp.dot(a_ref[...], b_ref[...],
                            preferred_element_type=jnp.float32)

    @pl.when(pl.program_id(2) == pl.num_programs(2) - 1)
    def _():
        res = acc_ref[...] + bias_ref[...]
        if res_ref is not None:                      # fused residual add
            res = res + res_ref[...].astype(jnp.float32)
        if relu:
            res = jnp.maximum(res, 0.0)
        o_ref[...] = res.astype(o_ref.dtype)


def matmul_bias_act(a, b, bias, relu, residual=None, out_dtype=ACT_DTYPE):
    """C = A @ B + bias (+ residual), optional ReLU. bf16 MXU, f32 accumulator.

    N is padded up to a multiple of 128 (lane-dense stores); K is never padded
    (a ragged K becomes a single full-extent block)."""
    M, K = a.shape
    _, N = b.shape
    tm = 1024 if M >= 1024 else _round_up(M, 8)
    mp = _round_up(M, tm)
    tk = _pick_tile(K, (512, 256, 128)) if K % 128 == 0 else K
    np_ = _round_up(N, 128)
    tn = _pick_tile(np_, (1024, 512, 256, 128))

    a = a.astype(ACT_DTYPE)
    b = b.astype(ACT_DTYPE)
    if mp != M:
        a = jnp.pad(a, ((0, mp - M), (0, 0)))
    if np_ != N:
        b = jnp.pad(b, ((0, 0), (0, np_ - N)))
    bias2 = bias.reshape(1, N).astype(jnp.float32)
    if np_ != N:
        bias2 = jnp.pad(bias2, ((0, 0), (0, np_ - N)))

    args = [a, b, bias2]
    in_specs = [pl.BlockSpec((tm, tk), lambda i, j, k: (i, k)),
                pl.BlockSpec((tk, tn), lambda i, j, k: (k, j)),
                pl.BlockSpec((1, tn), lambda i, j, k: (0, j))]
    if residual is not None:
        res = residual.astype(ACT_DTYPE)
        res = jnp.pad(res, ((0, mp - M), (0, np_ - res.shape[1])))
        args.append(res)
        in_specs.append(pl.BlockSpec((tm, tn), lambda i, j, k: (i, j)))

    out = pl.pallas_call(
        functools.partial(_matmul_kernel, relu=relu,
                          has_res=residual is not None),
        out_shape=jax.ShapeDtypeStruct((mp, np_), out_dtype),
        grid_spec=pltpu.PrefetchScalarGridSpec(
            num_scalar_prefetch=0,
            grid=(mp // tm, np_ // tn, K // tk),
            in_specs=in_specs,
            out_specs=pl.BlockSpec((tm, tn), lambda i, j, k: (i, j)),
            scratch_shapes=[pltpu.VMEM((tm, tn), jnp.float32)]),
        compiler_params=pltpu.CompilerParams(
            dimension_semantics=("parallel", "parallel", "arbitrary"),
            vmem_limit_bytes=VMEM_LIMIT),
    )(*args)
    return out[:M] if mp != M else out


# ----------------------------------------------------------------------------
# Direct stride-1 conv: per-image flat raster + shifted-tap GEMMs
# ----------------------------------------------------------------------------
def _direct_conv_kernel(*refs, taps_off, m_blk, relu, has_extra):
    if has_extra:
        a_ref, b_ref, bias_ref, ew_ref, eb_ref, o_ref, acc_ref = refs
    else:
        a_ref, b_ref, bias_ref, o_ref, acc_ref = refs

    @pl.when(pl.program_id(1) == 0)
    def _():
        acc_ref[...] = jnp.zeros_like(acc_ref)

    acc = acc_ref[...]
    for t, off in enumerate(taps_off):           # static tap offsets, unrolled
        acc = acc + jnp.dot(a_ref[pl.ds(off, m_blk), :], b_ref[t],
                            preferred_element_type=jnp.float32)
    acc_ref[...] = acc

    @pl.when(pl.program_id(1) == pl.num_programs(1) - 1)
    def _():
        res = acc_ref[...] + bias_ref[...]
        if relu:
            res = jnp.maximum(res, 0.0)
        if has_extra:                            # fused 1x1 classifier
            res = jnp.dot(res.astype(ew_ref.dtype), ew_ref[...],
                          preferred_element_type=jnp.float32) + eb_ref[...]
        o_ref[...] = res.astype(o_ref.dtype)


def direct_conv(x, w, b, *, dilation, pad, relu, extra=None):
    """Stride-1 KxK conv, one grid step per image.

    The spatially padded image is handed to the kernel as a flat
    (rows*width, Cin) raster; each of the kh*kw taps is a constant row offset
    into that raster, so the kernel accumulates kh*kw shifted GEMMs in a
    resident f32 accumulator.  No im2col / slab gather is materialized in HBM.
    Returns None if the per-image working set exceeds the VMEM budget (caller
    then falls back to im2col + GEMM)."""
    n, h, wd_, cin = x.shape
    cout, _, kh, kw = w.shape
    d = dilation
    hp, wp = h + 2 * pad, wd_ + 2 * pad
    out_h = hp - d * (kh - 1)
    out_w = wp - d * (kw - 1)
    taps_off = tuple(i * d * wp + j * d for i in range(kh) for j in range(kw))
    taps = kh * kw
    m_out = out_h * wp
    m_out_p = _round_up(m_out, 8)
    need = m_out_p + taps_off[-1]                # last flat element read + 1
    er = -(-max(need - hp * wp, 0) // wp)        # extra all-zero rows (slack)
    p_a = (hp + er) * wp

    if cin <= 512:
        tk = cin
    elif cin % 512 == 0:
        tk = 512
    else:
        return None
    nk = cin // tk

    if extra is not None:
        out_n, out_bytes, out_dtype = extra[0].shape[1], 4, jnp.float32
    else:
        out_n, out_bytes, out_dtype = cout, 2, ACT_DTYPE
    vmem_est = (2 * p_a * tk * 2 + 2 * taps * tk * cout * 2
                + 2 * m_out_p * out_n * out_bytes + m_out_p * cout * 4)
    if vmem_est > VMEM_BUDGET:
        return None

    xp = jnp.pad(x.astype(ACT_DTYPE),
                 ((0, 0), (pad, pad + er), (pad, pad), (0, 0)))
    a_flat = xp.reshape(n, p_a, cin)
    b_taps = jnp.transpose(w, (2, 3, 1, 0)).reshape(taps, cin, cout)
    b_taps = b_taps.astype(ACT_DTYPE)
    bias2 = b.reshape(1, cout).astype(jnp.float32)

    args = [a_flat, b_taps, bias2]
    in_specs = [pl.BlockSpec((None, p_a, tk), lambda bi, k: (bi, 0, k)),
                pl.BlockSpec((taps, tk, cout), lambda bi, k: (0, k, 0)),
                pl.BlockSpec((1, cout), lambda bi, k: (0, 0))]
    if extra is not None:
        args += [extra[0], extra[1]]
        in_specs += [pl.BlockSpec((cout, out_n), lambda bi, k: (0, 0)),
                     pl.BlockSpec((1, out_n), lambda bi, k: (0, 0))]

    out = pl.pallas_call(
        functools.partial(_direct_conv_kernel, taps_off=taps_off,
                          m_blk=m_out_p, relu=relu,
                          has_extra=extra is not None),
        out_shape=jax.ShapeDtypeStruct((n * m_out_p, out_n), out_dtype),
        grid_spec=pltpu.PrefetchScalarGridSpec(
            num_scalar_prefetch=0,
            grid=(n, nk),
            in_specs=in_specs,
            out_specs=pl.BlockSpec((m_out_p, out_n), lambda bi, k: (bi, 0)),
            scratch_shapes=[pltpu.VMEM((m_out_p, cout), jnp.float32)]),
        compiler_params=pltpu.CompilerParams(
            dimension_semantics=("parallel", "arbitrary"),
            vmem_limit_bytes=VMEM_LIMIT),
    )(*args)
    out = out.reshape(n, m_out_p, out_n)[:, :m_out, :]
    return out.reshape(n, out_h, wp, out_n)[:, :, :out_w, :]


# ----------------------------------------------------------------------------
# Row-wise log-softmax
# ----------------------------------------------------------------------------
def _log_softmax_kernel(x_ref, o_ref):
    x = x_ref[...]
    m = jnp.max(x, axis=-1, keepdims=True)
    s = x - m
    lse = jnp.log(jnp.sum(jnp.exp(s), axis=-1, keepdims=True))
    o_ref[...] = s - lse


def log_softmax_rows(x):
    M, C = x.shape
    tr = min(_round_up(M, 8), 16384)     # big row tiles -> negligible grid cost
    mp = _round_up(M, tr)
    xp = jnp.pad(x, ((0, mp - M), (0, 0))) if mp != M else x
    out = pl.pallas_call(
        _log_softmax_kernel,
        out_shape=jax.ShapeDtypeStruct((mp, C), x.dtype),
        grid_spec=pltpu.PrefetchScalarGridSpec(
            num_scalar_prefetch=0,
            grid=(mp // tr,),
            in_specs=[pl.BlockSpec((tr, C), lambda i: (i, 0))],
            out_specs=pl.BlockSpec((tr, C), lambda i: (i, 0))),
        compiler_params=pltpu.CompilerParams(
            dimension_semantics=("parallel",),
            vmem_limit_bytes=VMEM_LIMIT),
    )(xp)
    return out[:M] if mp != M else out


# ----------------------------------------------------------------------------
# Conv routing glue (space-to-depth for stride 2, im2col fallback)
# ----------------------------------------------------------------------------
def _space_to_depth2(x):
    n, h, w, c = x.shape
    if h % 2:
        x = jnp.pad(x, ((0, 0), (0, 1), (0, 0), (0, 0)))
        h += 1
    if w % 2:
        x = jnp.pad(x, ((0, 0), (0, 0), (0, 1), (0, 0)))
        w += 1
    x = x.reshape(n, h // 2, 2, w // 2, 2, c)
    x = jnp.transpose(x, (0, 1, 3, 2, 4, 5))
    return x.reshape(n, h // 2, w // 2, 4 * c)


def _s2d_weight(w):
    # (cout, cin, k, k) odd-k stride-2 weights -> (cout, 4*cin, ceil(k/2), ...)
    cout, cin, kh, kw = w.shape
    k2h, k2w = (kh + 1) // 2, (kw + 1) // 2
    wpad = jnp.pad(w, ((0, 0), (0, 0), (0, 2 * k2h - kh), (0, 2 * k2w - kw)))
    wpad = wpad.reshape(cout, cin, k2h, 2, k2w, 2)      # (co, c, a, p, b, q)
    wpad = jnp.transpose(wpad, (0, 3, 5, 1, 2, 4))      # (co, p, q, c, a, b)
    return wpad.reshape(cout, 4 * cin, k2h, k2w)


def _im2col(x, kh, kw, stride, dilation, padding):
    # Fallback only (convs whose per-image working set exceeds VMEM).
    n, h, w, c = x.shape
    xp = jnp.pad(x, ((0, 0), (padding, padding), (padding, padding), (0, 0)))
    hp, wp = xp.shape[1], xp.shape[2]
    out_h = (hp - (dilation * (kh - 1) + 1)) // stride + 1
    out_w = (wp - (dilation * (kw - 1) + 1)) // stride + 1
    cols = []
    for i in range(kh):
        for j in range(kw):
            hi = i * dilation
            wj = j * dilation
            cols.append(xp[:, hi:hi + (out_h - 1) * stride + 1:stride,
                              wj:wj + (out_w - 1) * stride + 1:stride, :])
    col = jnp.concatenate(cols, axis=-1)
    return col.reshape(n * out_h * out_w, kh * kw * c), out_h, out_w


def conv2d(x, w, b, stride, padding, dilation, relu, residual=None, extra=None):
    """NHWC conv.  w: (Cout, Cin_true, kh, kw) PyTorch layout.  The activation
    may carry extra zero channels (Cin_x >= Cin_true); the output channel dim
    is padded up to a multiple of 128 (lane-dense)."""
    n = x.shape[0]
    cout, cin_true, kh, kw = w.shape
    cin_x = x.shape[-1]
    if cin_x != cin_true:
        w = jnp.pad(w, ((0, 0), (0, cin_x - cin_true), (0, 0), (0, 0)))
    cout_p = _round_up(cout, 128)
    if cout_p != cout:
        w = jnp.pad(w, ((0, cout_p - cout), (0, 0), (0, 0), (0, 0)))
        b = jnp.pad(b, (0, cout_p - cout))

    if kh == 1 and kw == 1:                       # 1x1 -> plain GEMM
        if stride > 1:
            x = x[:, ::stride, ::stride, :]
        nh, nw = x.shape[1], x.shape[2]
        a = x.reshape(n * nh * nw, cin_x)
        bmat = w.reshape(cout_p, cin_x).T
        res2 = None if residual is None else residual.reshape(n * nh * nw, -1)
        out = matmul_bias_act(a, bmat, b, relu, residual=res2)
        return out.reshape(n, nh, nw, cout_p)

    extra_mm = None
    if extra is not None and extra[0].shape[1] == cout_p:
        ew, eb = extra                            # (ncls, cout, 1, 1), (ncls,)
        ncls = ew.shape[0]
        ncls_p = _round_up(max(ncls, 1), 128)
        ewm = jnp.pad(ew.reshape(ncls, cout_p), ((0, ncls_p - ncls), (0, 0)))
        ebm = jnp.pad(eb.reshape(1, ncls).astype(jnp.float32),
                      ((0, 0), (0, ncls_p - ncls)))
        extra_mm = (jnp.transpose(ewm, (1, 0)).astype(ACT_DTYPE), ebm)

    if stride == 1 and residual is None:          # direct per-image conv
        out = direct_conv(x, w, b, dilation=dilation, pad=padding, relu=relu,
                          extra=extra_mm)
        if out is not None:
            if extra is not None and extra_mm is None:
                out = conv2d(out, extra[0], extra[1], 1, 0, 1, relu=False)
            return out
    if (stride == 2 and dilation == 1 and kh == kw and kh % 2 == 1
            and residual is None):                # space-to-depth -> direct
        xs = _space_to_depth2(jnp.pad(
            x, ((0, 0), (padding, padding), (padding, padding), (0, 0))))
        out = direct_conv(xs, _s2d_weight(w), b, dilation=1, pad=0, relu=relu,
                          extra=extra_mm)
        if out is not None:
            if extra is not None and extra_mm is None:
                out = conv2d(out, extra[0], extra[1], 1, 0, 1, relu=False)
            return out

    # fallback: im2col + GEMM (only for very large images / fused residuals)
    a, oh, ow = _im2col(x.astype(ACT_DTYPE), kh, kw, stride, dilation, padding)
    bmat = jnp.transpose(w, (2, 3, 1, 0)).reshape(kh * kw * cin_x, cout_p)
    res2 = None if residual is None else residual.reshape(n * oh * ow, -1)
    out = matmul_bias_act(a, bmat, b, relu, residual=res2)
    out = out.reshape(n, oh, ow, cout_p)
    if extra is not None:
        out = conv2d(out, extra[0], extra[1], 1, 0, 1, relu=False)
    return out


def fold_bn(w, bn):
    scale = bn['gamma'] / jnp.sqrt(bn['var'] + BN_EPS)
    return w * scale[:, None, None, None], bn['beta'] - bn['mean'] * scale


def conv_bn(x, w, bn, stride, padding, dilation, relu, residual=None,
            extra=None):
    w_f, b_f = fold_bn(w, bn)
    return conv2d(x, w_f, b_f, stride, padding, dilation, relu,
                  residual=residual, extra=extra)


def maxpool_3x3_s2_p1(x):
    # Plain-JAX glue (tiny reduction); matches nn.MaxPool2d(3, 2, padding=1).
    return jax.lax.reduce_window(
        x, jnp.array(-jnp.inf, x.dtype), jax.lax.max,
        window_dimensions=(1, 3, 3, 1), window_strides=(1, 2, 2, 1),
        padding=((0, 0), (1, 1), (1, 1), (0, 0)))


def bilinear_upsample(x, out_h, out_w):
    # F.interpolate(..., mode='bilinear', align_corners=False) semantics.
    # TODO(synk): could be two interpolation-matrix GEMMs on the MXU; kept as
    #             plain-JAX gathers (channel count after the classifier is tiny).
    n, h, w, c = x.shape

    def idx(in_size, out_size):
        scale = in_size / out_size
        src = (jnp.arange(out_size, dtype=jnp.float32) + 0.5) * scale - 0.5
        src = jnp.maximum(src, 0.0)
        i0 = jnp.minimum(jnp.floor(src).astype(jnp.int32), in_size - 1)
        i1 = jnp.minimum(i0 + 1, in_size - 1)
        return i0, i1, src - i0.astype(jnp.float32)

    y0, y1, fy = idx(h, out_h)
    x0, x1, fx = idx(w, out_w)
    fx = fx[None, None, :, None]
    fy = fy[None, :, None, None]
    top = x[:, y0][:, :, x0] * (1.0 - fx) + x[:, y0][:, :, x1] * fx
    bot = x[:, y1][:, :, x0] * (1.0 - fx) + x[:, y1][:, :, x1] * fx
    return top * (1.0 - fy) + bot * fy


# ----------------------------------------------------------------------------
# Model: parameters + forward
# ----------------------------------------------------------------------------
def _bn_params(c):
    return dict(gamma=jnp.ones((c,), jnp.float32),
                beta=jnp.zeros((c,), jnp.float32),
                mean=jnp.zeros((c,), jnp.float32),
                var=jnp.ones((c,), jnp.float32))


def _he(key, shape):
    fan_in = shape[1] * shape[2] * shape[3]
    return jax.random.normal(key, shape, jnp.float32) * jnp.sqrt(2.0 / fan_in)


def build_params_and_cfg(key, num_classes=1):
    keys = iter(jax.random.split(key, 256))
    params = {}
    params['conv1_w'] = _he(next(keys), (64, 3, 7, 7))   # replaced conv1
    params['bn1'] = _bn_params(64)

    blocks_per_layer = [3, 4, 6, 3]
    planes_per_layer = [64, 128, 256, 512]
    layer_strides = [1, 2, 2, 2]
    dilate_flags = [False, False, True, True]   # replace_stride_with_dilation
    inplanes, dilation = 64, 1
    layer_params, layer_cfgs = [], []
    for planes, blocks, stride, dilate in zip(planes_per_layer,
                                              blocks_per_layer,
                                              layer_strides, dilate_flags):
        prev_dilation = dilation
        if dilate:
            dilation *= stride
            stride = 1
        ps, cfgs = [], []
        for bidx in range(blocks):
            if bidx == 0:
                blk_stride, blk_dil = stride, prev_dilation
                need_ds = (stride != 1) or (inplanes != planes * 4)
            else:
                blk_stride, blk_dil, need_ds = 1, dilation, False
            p = dict(
                w1=_he(next(keys), (planes, inplanes, 1, 1)),
                bn1=_bn_params(planes),
                w2=_he(next(keys), (planes, planes, 3, 3)),
                bn2=_bn_params(planes),
                w3=_he(next(keys), (planes * 4, planes, 1, 1)),
                bn3=_bn_params(planes * 4))
            if need_ds:
                p['wd'] = _he(next(keys), (planes * 4, inplanes, 1, 1))
                p['bnd'] = _bn_params(planes * 4)
            ps.append(p)
            cfgs.append((blk_stride, blk_dil))
            inplanes = planes * 4
        layer_params.append(ps)
        layer_cfgs.append(cfgs)
    params['layers'] = layer_params

    # FCNHead(2048, 512) with classifier[4] = Conv2d(512, num_classes, 1)
    params['head_w0'] = _he(next(keys), (512, 2048, 3, 3))
    params['head_bn0'] = _bn_params(512)
    params['head_w4'] = _he(next(keys), (num_classes, 512, 1, 1))
    params['head_b4'] = jnp.zeros((num_classes,), jnp.float32)
    return params, layer_cfgs


def bottleneck(x, p, stride, dilation):
    identity = x
    out = conv_bn(x, p['w1'], p['bn1'], 1, 0, 1, relu=True)
    out = conv_bn(out, p['w2'], p['bn2'], stride, dilation, dilation, relu=True)
    if 'wd' in p:
        identity = conv_bn(x, p['wd'], p['bnd'], stride, 0, 1, relu=False)
    # conv3 (1x1) with residual add + ReLU fused into the GEMM epilogue.
    return conv_bn(out, p['w3'], p['bn3'], 1, 0, 1, relu=True,
                   residual=identity)


def fcn_forward(params, x_nchw, layer_cfgs):
    # NCHW (PyTorch) -> NHWC (kernels), f32 -> bf16
    x = jnp.transpose(x_nchw, (0, 2, 3, 1)).astype(ACT_DTYPE)
    in_h, in_w = x.shape[1], x.shape[2]
    num_classes = params['head_b4'].shape[0]

    # backbone stem (7x7/s2 conv via space-to-depth direct conv) + maxpool
    x = conv_bn(x, params['conv1_w'], params['bn1'], 2, 3, 1, relu=True)
    x = maxpool_3x3_s2_p1(x)

    # resnet layers
    for layer_p, cfgs in zip(params['layers'], layer_cfgs):
        for p, (stride, dil) in zip(layer_p, cfgs):
            x = bottleneck(x, p, stride, dil)

    # FCN head: conv3x3+bn+relu with the 1x1 classifier fused into its epilogue
    # (Dropout(p=0.1) is identity in inference mode).
    x = conv_bn(x, params['head_w0'], params['head_bn0'], 1, 1, 1, relu=True,
                extra=(params['head_w4'], params['head_b4']))
    x = x[..., :num_classes].astype(jnp.float32)

    # bilinear upsample to input resolution (align_corners=False)
    x = bilinear_upsample(x, in_h, in_w)

    # log_softmax over channel dim (dim=1 in NCHW == last dim in NHWC)
    n, h, w, c = x.shape
    x = log_softmax_rows(x.reshape(n * h * w, c)).reshape(n, h, w, c)
    return jnp.transpose(x, (0, 3, 1, 2))


# ----------------------------------------------------------------------------
# Self-check of the conv kernels against lax.conv on bf16-rounded inputs
# ----------------------------------------------------------------------------
def _self_check():
    k = jax.random.split(jax.random.PRNGKey(1), 5)
    x = jax.random.normal(k[0], (1, 10, 12, 8), jnp.float32)
    w = jax.random.normal(k[1], (16, 8, 3, 3), jnp.float32) * 0.2
    b = jax.random.normal(k[2], (16,), jnp.float32) * 0.2
    xb = x.astype(ACT_DTYPE).astype(jnp.float32)
    wb = w.astype(ACT_DTYPE).astype(jnp.float32)
    for stride, pad, dil in ((1, 1, 1), (1, 2, 2), (2, 1, 1)):
        got = conv2d(x.astype(ACT_DTYPE), w, b, stride, pad, dil,
                     relu=False)[..., :16].astype(jnp.float32)
        ref = jax.lax.conv_general_dilated(
            xb, wb, window_strides=(stride, stride),
            padding=((pad, pad), (pad, pad)), rhs_dilation=(dil, dil),
            dimension_numbers=('NHWC', 'OIHW', 'NHWC')) + b
        assert got.shape == ref.shape, (got.shape, ref.shape)
        err = float(jnp.max(jnp.abs(got - ref)))
        assert err < 0.05, err
    # 1x1 GEMM path with fused residual + relu
    w1 = jax.random.normal(k[3], (16, 8, 1, 1), jnp.float32) * 0.2
    res = jax.random.normal(k[4], (1, 10, 12, 16), jnp.float32)
    resb = res.astype(ACT_DTYPE).astype(jnp.float32)
    got = conv2d(x.astype(ACT_DTYPE), w1, b, 1, 0, 1, relu=True,
                 residual=res.astype(ACT_DTYPE))[..., :16].astype(jnp.float32)
    w1b = w1.astype(ACT_DTYPE).astype(jnp.float32).reshape(16, 8)
    ref = jnp.maximum(jnp.einsum('nhwc,oc->nhwo', xb, w1b) + b + resb, 0.0)
    err = float(jnp.max(jnp.abs(got - ref)))
    assert err < 0.05, err


if __name__ == "__main__":
    _self_check()

    num_classes = 1
    params, layer_cfgs = build_params_and_cfg(jax.random.PRNGKey(42),
                                              num_classes)
    x = jax.random.normal(jax.random.PRNGKey(0), (2, 3, 32, 32), jnp.float32)

    fwd = jax.jit(functools.partial(fcn_forward, layer_cfgs=layer_cfgs))
    out = jax.block_until_ready(fwd(params, x))

    assert out.shape == (2, num_classes, 32, 32), out.shape
    assert bool(jnp.all(jnp.isfinite(out)))
    # with num_classes == 1, log_softmax over dim=1 is exactly 0 everywhere
    assert bool(jnp.allclose(out, 0.0))
    print("KERNEL_OK")
</pallas_src>

<mosaic_0001>
module attributes {stable_mosaic.version = 11 : i64} {
  func.func @_direct_conv_kernel(%arg0: i32, %arg1: i32, %arg2: memref<1x182x8xbf16, #tpu.memory_space<vmem>>, %arg3: memref<9x8x128xbf16, #tpu.memory_space<vmem>>, %arg4: memref<1x128xf32, #tpu.memory_space<vmem>>, %arg5: memref<144x128xbf16, #tpu.memory_space<vmem>>, %arg6: memref<144x128xf32, #tpu.memory_space<vmem>>) attributes {dimension_semantics = [#tpu.dimension_semantics<parallel>, #tpu.dimension_semantics<arbitrary>], iteration_bounds = array<i64: 1, 1>, scalar_prefetch = 0 : i64, scratch_operands = 1 : i64, tpu.core_type = #tpu.core_type<tc>, window_params = [{transform_indices = @transform_0, window_bounds = array<i64: 1, 182, 8>}, {transform_indices = @transform_1, window_bounds = array<i64: 9, 8, 128>}, {pipeline_mode = #tpu.pipeline_mode<synchronous>, transform_indices = @transform_2, window_bounds = array<i64: 1, 128>}, {transform_indices = @transform_3, window_bounds = array<i64: 144, 128>}]} {
    %c0_i32 = arith.constant 0 : i32
    %0 = arith.cmpi eq, %arg1, %c0_i32 : i32
    %1 = arith.extui %0 : i1 to i32
    %c0_i32_0 = arith.constant 0 : i32
    %2 = arith.cmpi ne, %1, %c0_i32_0 : i32
    scf.if %2 {
      %cst_54 = arith.constant 0.000000e+00 : f32
      %62 = vector.broadcast %cst_54 : f32 to vector<144x128xf32>
      %c0_55 = arith.constant 0 : index
      %c0_56 = arith.constant 0 : index
      %63 = vector.load %arg6[%c0_55, %c0_56] : memref<144x128xf32, #tpu.memory_space<vmem>>, vector<144x128xf32>
      tpu.vector_store %arg6[%c0_55, %c0_56], %62 {strides = array<i32>} : memref<144x128xf32, #tpu.memory_space<vmem>>, vector<144x128xf32>,
    } else {
    }
    %c0 = arith.constant 0 : index
    %c0_1 = arith.constant 0 : index
    %3 = vector.load %arg6[%c0, %c0_1] : memref<144x128xf32, #tpu.memory_space<vmem>>, vector<144x128xf32>
    %c0_2 = arith.constant 0 : index
    %c0_3 = arith.constant 0 : index
    %c0_4 = arith.constant 0 : index
    %4 = vector.load %arg2[%c0_2, %c0_3, %c0_4] : memref<1x182x8xbf16, #tpu.memory_space<vmem>>, vector<1x144x8xbf16>
    %5 = vector.shape_cast %4 : vector<1x144x8xbf16> to vector<144x8xbf16>
    %c0_5 = arith.constant 0 : index
    %c0_6 = arith.constant 0 : index
    %c0_7 = arith.constant 0 : index
    %6 = vector.load %arg3[%c0_5, %c0_6, %c0_7] : memref<9x8x128xbf16, #tpu.memory_space<vmem>>, vector<1x8x128xbf16>
    %7 = vector.shape_cast %6 : vector<1x8x128xbf16> to vector<8x128xbf16>
    %cst = arith.constant dense<0.000000e+00> : vector<144x128xf32>
    %8 = tpu.matmul %5, %7, %cst {dimension_numbers = #tpu.dot_dimension_numbers<[1], [0], [0], [1], [0, 0, 1, 1], [], []>} : vector<144x8xbf16>, vector<8x128xbf16>, vector<144x128xf32> -> vector<144x128xf32>
    %9 = arith.addf %3, %8 : vector<144x128xf32>
    %c0_8 = arith.constant 0 : index
    %c1 = arith.constant 1 : index
    %c0_9 = arith.constant 0 : index
    %10 = vector.load %arg2[%c0_8, %c1, %c0_9] : memref<1x182x8xbf16, #tpu.memory_space<vmem>>, vector<1x144x8xbf16>
    %11 = vector.shape_cast %10 : vector<1x144x8xbf16> to vector<144x8xbf16>
    %c1_10 = arith.constant 1 : index
    %c0_11 = arith.constant 0 : index
    %c0_12 = arith.constant 0 : index
    %12 = vector.load %arg3[%c1_10, %c0_11, %c0_12] : memref<9x8x128xbf16, #tpu.memory_space<vmem>>, vector<1x8x128xbf16>
    %13 = vector.shape_cast %12 : vector<1x8x128xbf16> to vector<8x128xbf16>
    %cst_13 = arith.constant dense<0.000000e+00> : vector<144x128xf32>
    %14 = tpu.matmul %11, %13, %cst_13 {dimension_numbers = #tpu.dot_dimension_numbers<[1], [0], [0], [1], [0, 0, 1, 1], [], []>} : vector<144x8xbf16>, vector<8x128xbf16>, vector<144x128xf32> -> vector<144x128xf32>
    %15 = arith.addf %9, %14 : vector<144x128xf32>
    %c0_14 = arith.constant 0 : index
    %c2 = arith.constant 2 : index
    %c0_15 = arith.constant 0 : index
    %16 = vector.load %arg2[%c0_14, %c2, %c0_15] : memref<1x182x8xbf16, #tpu.memory_space<vmem>>, vector<1x144x8xbf16>
    %17 = vector.shape_cast %16 : vector<1x144x8xbf16> to vector<144x8xbf16>
    %c2_16 = arith.constant 2 : index
    %c0_17 = arith.constant 0 : index
    %c0_18 = arith.constant 0 : index
    %18 = vector.load %arg3[%c2_16, %c0_17, %c0_18] : memref<9x8x128xbf16, #tpu.memory_space<vmem>>, vector<1x8x128xbf16>
    %19 = vector.shape_cast %18 : vector<1x8x128xbf16> to vector<8x128xbf16>
    %cst_19 = arith.constant dense<0.000000e+00> : vector<144x128xf32>
    %20 = tpu.matmul %17, %19, %cst_19 {dimension_numbers = #tpu.dot_dimension_numbers<[1], [0], [0], [1], [0, 0, 1, 1], [], []>} : vector<144x8xbf16>, vector<8x128xbf16>, vector<144x128xf32> -> vector<144x128xf32>
    %21 = arith.addf %15, %20 : vector<144x128xf32>
    %c0_20 = arith.constant 0 : index
    %c14 = arith.constant 14 : index
    %c0_21 = arith.constant 0 : index
    %22 = vector.load %arg2[%c0_20, %c14, %c0_21] : memref<1x182x8xbf16, #tpu.memory_space<vmem>>, vector<1x144x8xbf16>
    %23 = vector.shape_cast %22 : vector<1x144x8xbf16> to vector<144x8xbf16>
    %c3 = arith.constant 3 : index
    %c0_22 = arith.constant 0 : index
    %c0_23 = arith.constant 0 : index
    %24 = vector.load %arg3[%c3, %c0_22, %c0_23] : memref<9x8x128xbf16, #tpu.memory_space<vmem>>, vector<1x8x128xbf16>
    %25 = vector.shape_cast %24 : vector<1x8x128xbf16> to vector<8x128xbf16>
    %cst_24 = arith.constant dense<0.000000e+00> : vector<144x128xf32>
    %26 = tpu.matmul %23, %25, %cst_24 {dimension_numbers = #tpu.dot_dimension_numbers<[1], [0], [0], [1], [0, 0, 1, 1], [], []>} : vector<144x8xbf16>, vector<8x128xbf16>, vector<144x128xf32> -> vector<144x128xf32>
    %27 = arith.addf %21, %26 : vector<144x128xf32>
    %c0_25 = arith.constant 0 : index
    %c15 = arith.constant 15 : index
    %c0_26 = arith.constant 0 : index
    %28 = vector.load %arg2[%c0_25, %c15, %c0_26] : memref<1x182x8xbf16, #tpu.memory_space<vmem>>, vector<1x144x8xbf16>
    %29 = vector.shape_cast %28 : vector<1x144x8xbf16> to vector<144x8xbf16>
    %c4 = arith.constant 4 : index
    %c0_27 = arith.constant 0 : index
    %c0_28 = arith.constant 0 : index
    %30 = vector.load %arg3[%c4, %c0_27, %c0_28] : memref<9x8x128xbf16, #tpu.memory_space<vmem>>, vector<1x8x128xbf16>
    %31 = vector.shape_cast %30 : vector<1x8x128xbf16> to vector<8x128xbf16>
    %cst_29 = arith.constant dense<0.000000e+00> : vector<144x128xf32>
    %32 = tpu.matmul %29, %31, %cst_29 {dimension_numbers = #tpu.dot_dimension_numbers<[1], [0], [0], [1], [0, 0, 1, 1], [], []>} : vector<144x8xbf16>, vector<8x128xbf16>, vector<144x128xf32> -> vector<144x128xf32>
    %33 = arith.addf %27, %32 : vector<144x128xf32>
    %c0_30 = arith.constant 0 : index
    %c16 = arith.constant 16 : index
    %c0_31 = arith.constant 0 : index
    %34 = vector.load %arg2[%c0_30, %c16, %c0_31] : memref<1x182x8xbf16, #tpu.memory_space<vmem>>, vector<1x144x8xbf16>
    %35 = vector.shape_cast %34 : vector<1x144x8xbf16> to vector<144x8xbf16>
    %c5 = arith.constant 5 : index
    %c0_32 = arith.constant 0 : index
    %c0_33 = arith.constant 0 : index
    %36 = vector.load %arg3[%c5, %c0_32, %c0_33] : memref<9x8x128xbf16, #tpu.memory_space<vmem>>, vector<1x8x128xbf16>
    %37 = vector.shape_cast %36 : vector<1x8x128xbf16> to vector<8x128xbf16>
    %cst_34 = arith.constant dense<0.000000e+00> : vector<144x128xf32>
    %38 = tpu.matmul %35, %37, %cst_34 {dimension_numbers = #tpu.dot_dimension_numbers<[1], [0], [0], [1], [0, 0, 1, 1], [], []>} : vector<144x8xbf16>, vector<8x128xbf16>, vector<144x128xf32> -> vector<144x128xf32>
    %39 = arith.addf %33, %38 : vector<144x128xf32>
    %c0_35 = arith.constant 0 : index
    %c28 = arith.constant 28 : index
    %c0_36 = arith.constant 0 : index
    %40 = vector.load %arg2[%c0_35, %c28, %c0_36] : memref<1x182x8xbf16, #tpu.memory_space<vmem>>, vector<1x144x8xbf16>
    %41 = vector.shape_cast %40 : vector<1x144x8xbf16> to vector<144x8xbf16>
    %c6 = arith.constant 6 : index
    %c0_37 = arith.constant 0 : index
    %c0_38 = arith.constant 0 : index
    %42 = vector.load %arg3[%c6, %c0_37, %c0_38] : memref<9x8x128xbf16, #tpu.memory_space<vmem>>, vector<1x8x128xbf16>
    %43 = vector.shape_cast %42 : vector<1x8x128xbf16> to vector<8x128xbf16>
    %cst_39 = arith.constant dense<0.000000e+00> : vector<144x128xf32>
    %44 = tpu.matmul %41, %43, %cst_39 {dimension_numbers = #tpu.dot_dimension_numbers<[1], [0], [0], [1], [0, 0, 1, 1], [], []>} : vector<144x8xbf16>, vector<8x128xbf16>, vector<144x128xf32> -> vector<144x128xf32>
    %45 = arith.addf %39, %44 : vector<144x128xf32>
    %c0_40 = arith.constant 0 : index
    %c29 = arith.constant 29 : index
    %c0_41 = arith.constant 0 : index
    %46 = vector.load %arg2[%c0_40, %c29, %c0_41] : memref<1x182x8xbf16, #tpu.memory_space<vmem>>, vector<1x144x8xbf16>
    %47 = vector.shape_cast %46 : vector<1x144x8xbf16> to vector<144x8xbf16>
    %c7 = arith.constant 7 : index
    %c0_42 = arith.constant 0 : index
    %c0_43 = arith.constant 0 : index
    %48 = vector.load %arg3[%c7, %c0_42, %c0_43] : memref<9x8x128xbf16, #tpu.memory_space<vmem>>, vector<1x8x128xbf16>
    %49 = vector.shape_cast %48 : vector<1x8x128xbf16> to vector<8x128xbf16>
    %cst_44 = arith.constant dense<0.000000e+00> : vector<144x128xf32>
    %50 = tpu.matmul %47, %49, %cst_44 {dimension_numbers = #tpu.dot_dimension_numbers<[1], [0], [0], [1], [0, 0, 1, 1], [], []>} : vector<144x8xbf16>, vector<8x128xbf16>, vector<144x128xf32> -> vector<144x128xf32>
    %51 = arith.addf %45, %50 : vector<144x128xf32>
    %c0_45 = arith.constant 0 : index
    %c30 = arith.constant 30 : index
    %c0_46 = arith.constant 0 : index
    %52 = vector.load %arg2[%c0_45, %c30, %c0_46] : memref<1x182x8xbf16, #tpu.memory_space<vmem>>, vector<1x144x8xbf16>
    %53 = vector.shape_cast %52 : vector<1x144x8xbf16> to vector<144x8xbf16>
    %c8 = arith.constant 8 : index
    %c0_47 = arith.constant 0 : index
    %c0_48 = arith.constant 0 : index
    %54 = vector.load %arg3[%c8, %c0_47, %c0_48] : memref<9x8x128xbf16, #tpu.memory_space<vmem>>, vector<1x8x128xbf16>
    %55 = vector.shape_cast %54 : vector<1x8x128xbf16> to vector<8x128xbf16>
    %cst_49 = arith.constant dense<0.000000e+00> : vector<144x128xf32>
    %56 = tpu.matmul %53, %55, %cst_49 {dimension_numbers = #tpu.dot_dimension_numbers<[1], [0], [0], [1], [0, 0, 1, 1], [], []>} : vector<144x8xbf16>, vector<8x128xbf16>, vector<144x128xf32> -> vector<144x128xf32>
    %57 = arith.addf %51, %56 : vector<144x128xf32>
    %c0_50 = arith.constant 0 : index
    %c0_51 = arith.constant 0 : index
    %58 = vector.load %arg6[%c0_50, %c0_51] : memref<144x128xf32, #tpu.memory_space<vmem>>, vector<144x128xf32>
    tpu.vector_store %arg6[%c0_50, %c0_51], %57 {strides = array<i32>} : memref<144x128xf32, #tpu.memory_space<vmem>>, vector<144x128xf32>,
    %c0_i32_52 = arith.constant 0 : i32
    %59 = arith.cmpi eq, %arg1, %c0_i32_52 : i32
    %60 = arith.extui %59 : i1 to i32
    %c0_i32_53 = arith.constant 0 : i32
    %61 = arith.cmpi ne, %60, %c0_i32_53 : i32
    scf.if %61 {
      %c0_54 = arith.constant 0 : index
      %c0_55 = arith.constant 0 : index
      %62 = vector.load %arg6[%c0_54, %c0_55] : memref<144x128xf32, #tpu.memory_space<vmem>>, vector<144x128xf32>
      %c0_56 = arith.constant 0 : index
      %c0_57 = arith.constant 0 : index
      %63 = vector.load %arg4[%c0_56, %c0_57] : memref<1x128xf32, #tpu.memory_space<vmem>>, vector<1x128xf32>
      %64 = vector.broadcast %63 : vector<1x128xf32> to vector<144x128xf32>
      %65 = arith.addf %62, %64 : vector<144x128xf32>
      %66 = arith.truncf %65 : vector<144x128xf32> to vector<144x128xbf16>
      %c0_58 = arith.constant 0 : index
      %c0_59 = arith.constant 0 : index
      %67 = vector.load %arg5[%c0_58, %c0_59] : memref<144x128xbf16, #tpu.memory_space<vmem>>, vector<144x128xbf16>
      tpu.vector_store %arg5[%c0_58, %c0_59], %66 {strides = array<i32>} : memref<144x128xbf16, #tpu.memory_space<vmem>>, vector<144x128xbf16>,
    } else {
    }
    return
  }
  func.func @transform_0(%arg0: i32, %arg1: i32) -> (i32, i32, i32) {
    %c0_i32 = arith.constant 0 : i32
    %c0_i32_0 = arith.constant 0 : i32
    return %arg0, %c0_i32, %arg1 : i32, i32, i32
  }
  func.func @transform_1(%arg0: i32, %arg1: i32) -> (i32, i32, i32) {
    %c0_i32 = arith.constant 0 : i32
    %c0_i32_0 = arith.constant 0 : i32
    %c0_i32_1 = arith.constant 0 : i32
    return %c0_i32, %arg1, %c0_i32_0 : i32, i32, i32
  }
  func.func @transform_2(%arg0: i32, %arg1: i32) -> (i32, i32) {
    %c0_i32 = arith.constant 0 : i32
    %c0_i32_0 = arith.constant 0 : i32
    %c0_i32_1 = arith.constant 0 : i32
    return %c0_i32, %c0_i32_0 : i32, i32
  }
  func.func @transform_3(%arg0: i32, %arg1: i32) -> (i32, i32) {
    %c0_i32 = arith.constant 0 : i32
    %c0_i32_0 = arith.constant 0 : i32
    return %arg0, %c0_i32 : i32, i32
  }
}

</mosaic_0001>

<bundles_post_ra>
// kernel: tpu_custom_call.1
= control target key start
LH: loop header
LB: loop body
LE: loop exit
PB: predicated region body
PF: predicated region fallthrough
CT: control target
= control target key end

     0   :  { %vm148_vm0 = vcmask 1043456   ;;  %v2991_v1 = vmov 0.0   ;;  %vm120_vm1 = vcmask 64512   ;;  %vm2992_vm2 = vmmov 0   ;;  %s3931_s0 = inlined_call_operand.vmem [shape: bf16[1,182,8], index: 0, kind: input, shape index: {}]   ;;  %s3932_s1 = inlined_call_operand.vmem [shape: bf16[9,8,128], index: 1, kind: input, shape index: {}]   ;;  %s3933_s2 = inlined_call_operand.vmem [shape: f32[1,128], index: 2, kind: input, shape index: {}]   ;;  %s3934_s3 = inlined_call_operand.hbm [shape: bf16[144,128], index: 3, kind: output, shape index: {}]  }
   0x1   :  { %v74_v0 = vld [vmem:[%s3932_s1] sm:$0xf]  ;;  %2568 = vmatprep.subr.bf16.mxu0 %v2991_v1  ;;  %2910 = vmatprep.subr.bf16.mxu1 %v2991_v1  ;;  %v2918_v4 = vld [vmem:[%s3931_s0 + $0x28] sm:$0xff]   ;;  %v2265_v6 = vld [vmem:[%s3932_s1 + $0x4] sm:$0xf]  ;;  %vm580_vm4 = vcmask 1046528  }
   0x2   :  { %v150_v2 = vsel %vm148_vm0, %v74_v0, 0  ;;  %v2917_v3 = vld [vmem:[%s3931_s0] sm:$0xff]   ;;  %2570 = vmatprep.mubr.msk.bf16.mxu0 %vm2992_vm2, %v2991_v1  ;;  %2590 = vmatprep.mubr.msk.bf16.mxu1 %vm2992_vm2, %v2991_v1  ;;  %v2285_v5 = vld [vmem:[%s3932_s1 + $0x8] sm:$0xf]  ;;  %v449_v8 = vsel %vm148_vm0, %v2265_v6, 0  ;;  %v2920_v10 = vld [vmem:[%s3931_s0 + $0x30] sm:$0xff]  }
   0x3   :  { %2569 = vmatpush3.bf16.msra.mxu0 %v150_v2  ;;  %2911 = vmatpush3.bf16.msra.mxu1 %v150_v2  ;;  %v628_v7 = vsel %vm148_vm0, %v2285_v5, 0  ;;  %v2919_v9 = vld [vmem:[%s3931_s0 + $0x8] sm:$0xff]   ;;  %v275_v11 = vld [vmem:[%s3931_s0] sm:$0xf]  ;;  %v276_v12 = vld [vmem:[%s3931_s0 + $0x4] sm:$0xf] }
   0x4   :  { %2644 = vmatprep.subr.bf16.mxu0 %v2991_v1  ;;  %2606 = vmatprep.subr.bf16.mxu1 %v2991_v1  ;;  %v2921_v13 = vld [vmem:[%s3931_s0 + $0x10] sm:$0xff]   ;;  %v2922_v14 = vld [vmem:[%s3931_s0 + $0x38] sm:$0xff]   ;;  %v2266_v15 = vcombine.low %v275_v11, %v276_v12  ;;  %v2927_v16 = vld [vmem:[%s3931_s0 + $0x8] sm:$0xff]   ;;  %vm344_vm3 = vsmask.f32 7424 }
   0x5   :  { %v2923_v18 = vld [vmem:[%s3931_s0 + $0x18] sm:$0xff]   ;;  %v2924_v19 = vld [vmem:[%s3931_s0 + $0x40] sm:$0xff]   ;;  %v353_v22 = vshll.u32 %v2927_v16, 16  ;;  %v2928_v25 = vld [vmem:[%s3931_s0 + $0x10] sm:$0xff]   ;;  %v357_v30 = vshrl.u32 %v2927_v16, 16  ;;  %v582_v37 = vrot.slane %v2927_v16, 1 }
   0x6   :  { %2571 = vmatmul.mubr.msk.bf16.vlgmr.msra.gmra.mxu0 %vm120_vm1, %v2917_v3  ;;  %2591 = vmatmul.mubr.msk.bf16.vlgmr.msra.gmra.mxu1 %vm120_vm1, %v2918_v4  ;;  %v348_v17 = vshll.u32 %v2266_v15, 16  ;;  %v346_v20 = vshrl.u32 %v2266_v15, 16  ;;  %v574_v26 = vld [vmem:[%s3931_s0] sm:$0xe]  ;;  %v2296_v28 = vld [vmem:[%s3932_s1 + $0xc] sm:$0xf] }
   0x7   :  { %2645 = vmatpush3.bf16.msra.mxu0 %v628_v7  ;;  %2574 = vmatprep.mubr.msk.bf16.mxu0 %vm2992_vm2, %v2991_v1  ;;  %v355_v24 = vrot.slane %v353_v22, 1  ;;  %v2925_v27 = vld [vmem:[%s3931_s0 + $0x20] sm:$0xff]   ;;  %v361_v31 = vshll.u32 %v2928_v25, 16  ;;  %v2286_v32 = vcombine.low %v574_v26, %v276_v12  ;;  %v870_v33 = vsel %vm148_vm0, %v2296_v28, 0  ;;  %v2930_v38 = vld [vmem:[%s3931_s0 + $0x18] sm:$0xff]  }
   0x8   :  { %2594 = vmatprep.mubr.msk.bf16.mxu1 %vm2992_vm2, %v2991_v1  ;;  %2607 = vmatpush3.bf16.msra.mxu1 %v449_v8  ;;  %v350_v21 = vrot.slane %v348_v17, 1  ;;  %v2316_v39 = vld [vmem:[%s3932_s1 + $0x10] sm:$0xf]  ;;  %v365_v42 = vshrl.u32 %v2928_v25, 16  ;;  %v369_v43 = vshll.u32 %v2930_v38, 16  ;;  %v2931_v45 = vld [vmem:[%s3931_s0 + $0x20] sm:$0xff]  }
   0x9   :  { %2682 = vmatprep.subr.bf16.mxu1 %v2991_v1  ;;  %2720 = vmatprep.subr.bf16.mxu0 %v2991_v1  ;;  %v359_v34 = vor.u32 %v357_v30, %v355_v24  ;;  %v363_v35 = vrot.slane %v361_v31, 1  ;;  %v581_v36 = vrot.slane %v2286_v32, 1  ;;  %v1119_v44 = vsel %vm148_vm0, %v2316_v39, 0  ;;  %v3138_v51 = vld [vmem:[%s3931_s0 + $0x8] sm:$0xf] }
   0xa   :  { %v351_v23 = vor.u32 %v350_v21, %v346_v20  ;;  %v371_v47 = vrot.slane %v369_v43, 1  ;;  %v584_v48 = vrot.slane %v2928_v25, 1  ;;  %v373_v49 = vshrl.u32 %v2930_v38, 16  ;;  %v3145_v54 = vld [vmem:[%s3931_s0 + $0xc] sm:$0xf] }
   0xb   :  { %v364_v40 = vsel %vm344_vm3, %v359_v34, %v363_v35  ;;  %v583_v41 = vsel %vm580_vm4, %v581_v36, %v582_v37  ;;  %v367_v46 = vor.u32 %v365_v42, %v363_v35  ;;  %v377_v50 = vshll.u32 %v2931_v45, 16 }
   0xc   :  { %v356_v29 = vsel %vm344_vm3, %v351_v23, %v355_v24  ;;  %v585_v53 = vsel %vm580_vm4, %v582_v37, %v584_v48  ;;  %v2328_v55 = vcombine.low %v3138_v51, %v3145_v54 }
   0xd   :  { %v372_v52 = vsel %vm344_vm3, %v367_v46, %v371_v47 }
   0xe   :  { %2575 = vmatmul.mubr.msk.bf16.gmra.mxu0 %vm120_vm1, %v2919_v9  ;;  %2595 = vmatmul.mubr.msk.bf16.gmra.mxu1 %vm120_vm1, %v2920_v10 }
   0xf   :  { %2578 = vmatprep.mubr.msk.bf16.mxu0 %vm2992_vm2, %v2991_v1  ;;  %2598 = vmatprep.mubr.msk.bf16.mxu1 %vm2992_vm2, %v2991_v1 }
  0x16   :  { %2579 = vmatmul.mubr.msk.bf16.gmra.mxu0 %vm120_vm1, %v2921_v13  ;;  %2599 = vmatmul.mubr.msk.bf16.gmra.mxu1 %vm120_vm1, %v2922_v14 }
  0x17   :  { %2582 = vmatprep.mubr.msk.bf16.mxu0 %vm2992_vm2, %v2991_v1  ;;  %2602 = vmatprep.mubr.msk.bf16.mxu1 %vm2992_vm2, %v2991_v1 }
  0x1e   :  { %2583 = vmatmul.mubr.msk.bf16.gmra.mxu0 %vm120_vm1, %v2923_v18  ;;  %2603 = vmatmul.mubr.msk.bf16.gmra.mxu1 %vm120_vm1, %v2924_v19 }
  0x1f   :  { %2586 = vmatprep.mubr.msk.bf16.mxu0 %vm2992_vm2, %v2991_v1  ;;  %2608 = vmatprep.mubr.msk.bf16.mxu1 %vm2992_vm2, %v2991_v1 }
  0x26   :  { %2587 = vmatmul.mubr.msk.bf16.gmra.mxu0 %vm120_vm1, %v2925_v27  ;;  %2609 = vmatmul.mubr.msk.bf16.vlgmr.msra.gmra.mxu1 %vm120_vm1, %v356_v29 }
  0x27   :  { %2612 = vmatprep.mubr.msk.bf16.mxu1 %vm2992_vm2, %v2991_v1  ;;  %2646 = vmatprep.mubr.msk.bf16.mxu0 %vm2992_vm2, %v2991_v1 }
  0x28   :  { %2683 = vmatpush3.bf16.msra.mxu1 %v870_v33 }
  0x29   :  { %2758 = vmatprep.subr.bf16.mxu1 %v2991_v1 }
  0x2e   :  { %2613 = vmatmul.mubr.msk.bf16.gmra.mxu1 %vm120_vm1, %v364_v40  ;;  %2647 = vmatmul.mubr.msk.bf16.vlgmr.msra.gmra.mxu0 %vm120_vm1, %v583_v41 }
  0x2f   :  { %2721 = vmatpush3.bf16.msra.mxu0 %v1119_v44  ;;  %2616 = vmatprep.mubr.msk.bf16.mxu1 %vm2992_vm2, %v2991_v1 }
  0x30   :  { %2650 = vmatprep.mubr.msk.bf16.mxu0 %vm2992_vm2, %v2991_v1  ;;  %2796 = vmatprep.subr.bf16.mxu0 %v2991_v1 }
  0x31   :  { %8 = vsyncpa [#allocation4], 0  ;;  %v586_v56 = vrot.slane %v2930_v38, 1  ;;  %v375_v57 = vor.u32 %v373_v49, %v371_v47  ;;  %v379_v58 = vrot.slane %v377_v50, 1  ;;  %v2932_v59 = vld [vmem:[%s3931_s0 + $0x28] sm:$0xff]   ;;  %v381_v2 = vshrl.u32 %v2931_v45, 16 }
  0x32   :  { %v3161_v60 = vld [vmem:[%s3931_s0 + $0x10] sm:$0xf]  ;;  %v3166_v61 = vld [vmem:[%s3931_s0 + $0x14] sm:$0xf]  ;;  %v385_v3 = vshll.u32 %v2932_v59, 16  ;;  %v588_v6 = vrot.slane %v2931_v45, 1 }
  0x33   :  { %v2329_v62 = vcombine.low %v3161_v60, %v3166_v61  ;;  %v380_v63 = vsel %vm344_vm3, %v375_v57, %v379_v58  ;;  %v587_v0 = vsel %vm580_vm4, %v584_v48, %v586_v56  ;;  %v383_v4 = vor.u32 %v381_v2, %v379_v58  ;;  %v2933_v7 = vld [vmem:[%s3931_s0 + $0x30] sm:$0xff]   ;;  %v3186_v12 = vld [vmem:[%s3931_s0 + $0x18] sm:$0xf]  ;;  %v3191_v13 = vld [vmem:[%s3931_s0 + $0x1c] sm:$0xf] }
  0x34   :  { %v387_v5 = vrot.slane %v385_v3, 1  ;;  %v589_v9 = vsel %vm580_vm4, %v586_v56, %v588_v6  ;;  %v389_v10 = vshrl.u32 %v2932_v59, 16  ;;  %v393_v11 = vshll.u32 %v2933_v7, 16  ;;  %v2934_v18 = vld [vmem:[%s3931_s0 + $0x38] sm:$0xff]   ;;  %v3209_v23 = vld [vmem:[%s3931_s0 + $0x20] sm:$0xf] }
  0x35   :  { %v2330_v14 = vcombine.low %v3186_v12, %v3191_v13  ;;  %v590_v17 = vrot.slane %v2932_v59, 1  ;;  %v397_v21 = vshrl.u32 %v2933_v7, 16  ;;  %v401_v22 = vshll.u32 %v2934_v18, 16  ;;  %v3214_v24 = vld [vmem:[%s3931_s0 + $0x24] sm:$0xf] }
  0x36   :  { %2617 = vmatmul.mubr.msk.bf16.gmra.mxu1 %vm120_vm1, %v372_v52  ;;  %2651 = vmatmul.mubr.msk.bf16.gmra.mxu0 %vm120_vm1, %v585_v53  ;;  %v388_v8 = vsel %vm344_vm3, %v383_v4, %v387_v5  ;;  %v391_v15 = vor.u32 %v389_v10, %v387_v5  ;;  %v395_v16 = vrot.slane %v393_v11, 1  ;;  %v2331_v25 = vcombine.low %v3209_v23, %v3214_v24  ;;  %v2935_v29 = vld [vmem:[%s3931_s0 + $0x40] sm:$0xff]   ;;  %v3232_v34 = vld [vmem:[%s3931_s0 + $0x28] sm:$0xf]  ;;  %v3237_v35 = vld [vmem:[%s3931_s0 + $0x2c] sm:$0xf] }
  0x37   :  { %2620 = vmatprep.mubr.msk.bf16.mxu1 %vm2992_vm2, %v2991_v1  ;;  %2654 = vmatprep.mubr.msk.bf16.mxu0 %vm2992_vm2, %v2991_v1  ;;  %v591_v20 = vsel %vm580_vm4, %v588_v6, %v590_v17  ;;  %v403_v27 = vrot.slane %v401_v22, 1  ;;  %v592_v28 = vrot.slane %v2933_v7, 1  ;;  %v405_v32 = vshrl.u32 %v2934_v18, 16  ;;  %v2936_v40 = vld [vmem:[%s3931_s0 + $0x48] ss:$0 sps:$4 sm:$0x11]  }
  0x38   :  { %v396_v19 = vsel %vm344_vm3, %v391_v15, %v395_v16  ;;  %v399_v26 = vor.u32 %v397_v21, %v395_v16  ;;  %v409_v33 = vshll.u32 %v2935_v29, 16  ;;  %v2332_v36 = vcombine.low %v3232_v34, %v3237_v35  ;;  %v3255_v45 = vld [vmem:[%s3931_s0 + $0x30] sm:$0xf]  ;;  %v3260_v46 = vld [vmem:[%s3931_s0 + $0x34] sm:$0xf] }
  0x39   :  { %v593_v31 = vsel %vm580_vm4, %v590_v17, %v592_v28  ;;  %v407_v37 = vor.u32 %v405_v32, %v403_v27  ;;  %v594_v39 = vrot.slane %v2934_v18, 1  ;;  %v413_v43 = vshrl.u32 %v2935_v29, 16  ;;  %v753_v52 = vld [vmem:[%s3931_s0 + $0x4] sm:$0x8]  ;;  %v3281_v59 = vld [vmem:[%s3931_s0 + $0x38] sm:$0xf] }
  0x3a   :  { %v404_v30 = vsel %vm344_vm3, %v399_v26, %v403_v27  ;;  %v411_v38 = vrot.slane %v409_v33, 1  ;;  %v417_v44 = vshll.u32 %v2936_v40, 16  ;;  %v2333_v47 = vcombine.low %v3255_v45, %v3260_v46  ;;  %v3311_v21 = vld [vmem:[%s3931_s0 + $0x44] sm:$0xf]  ;;  %v2346_v32 = vld [vmem:[%s3932_s1 + $0x18] sm:$0xf] }
  0x3b   :  { %v595_v42 = vsel %vm580_vm4, %v592_v28, %v594_v39  ;;  %v596_v50 = vrot.slane %v2935_v29, 1  ;;  %v2297_v57 = vcombine.low %v753_v52, %v3138_v51  ;;  %v2298_v58 = vcombine.low %v3145_v54, %v3161_v60  ;;  %v3458_v54 = vld [vmem:[%s3931_s0 + $0x1c] sm:$0xff]  }
  0x3c   :  { %v412_v41 = vsel %vm344_vm3, %v407_v37, %v411_v38  ;;  %v415_v48 = vor.u32 %v413_v43, %v411_v38  ;;  %v419_v49 = vrot.slane %v417_v44, 1  ;;  %v598_v2 = vrot.slane %v2936_v40, 1 }
  0x3d   :  { %v597_v56 = vsel %vm580_vm4, %v594_v39, %v596_v50  ;;  %v1003_v3 = vshrl.u32 %v2297_v57, 16  ;;  %v1006_v4 = vshll.u32 %v2297_v57, 16  ;;  %v823_v5 = vrot.slane %v2297_v57, 3 }
  0x3e   :  { %2621 = vmatmul.mubr.msk.bf16.gmra.mxu1 %vm120_vm1, %v380_v63  ;;  %2655 = vmatmul.mubr.msk.bf16.gmra.mxu0 %vm120_vm1, %v587_v0  ;;  %v420_v53 = vsel %vm344_vm3, %v415_v48, %v419_v49  ;;  %v3286_v63 = vld [vmem:[%s3931_s0 + $0x3c] sm:$0xf]  ;;  %v824_v6 = vrot.slane %v2298_v58, 3  ;;  %v1011_v7 = vshrl.u32 %v2298_v58, 16  ;;  %vm822_vm5 = vcmask 1044480  }
  0x3f   :  { %2624 = vmatprep.mubr.msk.bf16.mxu1 %vm2992_vm2, %v2991_v1  ;;  %2658 = vmatprep.mubr.msk.bf16.mxu0 %vm2992_vm2, %v2991_v1  ;;  %v2334_v0 = vcombine.low %v3281_v59, %v3286_v63  ;;  %v2299_v10 = vcombine.low %v3166_v61, %v3186_v12  ;;  %v1005_v11 = vrot.slane %v1003_v3, 3  ;;  %v1008_v15 = vrot.slane %v1006_v4, 4 }
  0x40   :  { %v599_v16 = vsel %vm580_vm4, %v596_v50, %v598_v2  ;;  %v825_v17 = vsel %vm822_vm5, %v823_v5, %v824_v6  ;;  %v1013_v18 = vrot.slane %v1011_v7, 3  ;;  %vm1001_vm6 = vsmask.f32 4352 }
  0x41   :  { %v826_v27 = vrot.slane %v2299_v10, 3  ;;  %v1009_v28 = vor.u32 %v1008_v15, %v1005_v11  ;;  %v2300_v33 = vcombine.low %v3191_v13, %v3209_v23  ;;  %v2301_v49 = vcombine.low %v3214_v24, %v3232_v34  ;;  %v3499_v13 = vld [vmem:[%s3931_s0 + $0x2c] sm:$0xff]   ;;  %v3523_v24 = vld [vmem:[%s3931_s0 + $0x34] sm:$0xff]  }
  0x42   :  { %v2302_v4 = vcombine.low %v3237_v35, %v3255_v45  ;;  %vm1477_vm7 = vcmask 1045504   ;;  %v3547_v35 = vld [vmem:[%s3931_s0 + $0x3c] sm:$0xff]   ;;  %vm1656_vm8 = vsmask.f32 5376 }
  0x43   :  { %v827_v37 = vsel %vm822_vm5, %v824_v6, %v826_v27  ;;  %v1029_v44 = vshrl.u32 %v2300_v33, 16  ;;  %v1032_v48 = vshll.u32 %v2300_v33, 16  ;;  %v830_v57 = vrot.slane %v2301_v49, 3 }
  0x44   :  { %v1038_v2 = vshrl.u32 %v2301_v49, 16  ;;  %v1041_v3 = vshll.u32 %v2301_v49, 16  ;;  %v1047_v11 = vshrl.u32 %v2302_v4, 16  ;;  %v1050_v15 = vshll.u32 %v2302_v4, 16 }
  0x46   :  { %2625 = vmatmul.mubr.msk.bf16.gmra.mxu1 %vm120_vm1, %v388_v8  ;;  %2659 = vmatmul.mubr.msk.bf16.gmra.mxu0 %vm120_vm1, %v589_v9  ;;  %v1014_v8 = vshll.u32 %v2298_v58, 16  ;;  %v2327_v9 = vld [vmem:[%s3932_s1 + $0x14] sm:$0xf]  ;;  %v1040_v7 = vrot.slane %v1038_v2, 3  ;;  %v3396_v2 = vld [vmem:[%s3931_s0 + $0x4c] sm:$0xf] }
  0x47   :  { %2628 = vmatprep.mubr.msk.bf16.mxu1 %vm2992_vm2, %v2991_v1  ;;  %2662 = vmatprep.mubr.msk.bf16.mxu0 %vm2992_vm2, %v2991_v1  ;;  %v1283_v26 = vsel %vm148_vm0, %v2327_v9, 0  ;;  %v832_v9 = vrot.slane %v2302_v4, 3 }
  0x4e   :  { %2629 = vmatmul.mubr.msk.bf16.gmra.mxu1 %vm120_vm1, %v396_v19  ;;  %2663 = vmatmul.mubr.msk.bf16.gmra.mxu0 %vm120_vm1, %v591_v20  ;;  %v1016_v19 = vrot.slane %v1014_v8, 4  ;;  %v3306_v20 = vld [vmem:[%s3931_s0 + $0x40] sm:$0xf]  ;;  %v1043_v8 = vrot.slane %v1041_v3, 4 }
  0x4f   :  { %2632 = vmatprep.mubr.msk.bf16.mxu1 %vm2992_vm2, %v2991_v1  ;;  %2666 = vmatprep.mubr.msk.bf16.mxu0 %vm2992_vm2, %v2991_v1  ;;  %v2335_v22 = vcombine.low %v3306_v20, %v3311_v21 }
  0x50   :  { %v1017_v29 = vor.u32 %v1016_v19, %v1013_v18  ;;  %v1049_v19 = vrot.slane %v1047_v11, 3 }
  0x52   :  { %v1018_v38 = vsel %vm1001_vm6, %v1009_v28, %v1017_v29 }
  0x56   :  { %2633 = vmatmul.mubr.msk.bf16.gmra.mxu1 %vm120_vm1, %v404_v30  ;;  %2667 = vmatmul.mubr.msk.bf16.gmra.mxu0 %vm120_vm1, %v593_v31  ;;  %v1020_v30 = vshrl.u32 %v2299_v10, 16  ;;  %v1023_v31 = vshll.u32 %v2299_v10, 16  ;;  %v1044_v10 = vor.u32 %v1043_v8, %v1040_v7  ;;  %v2317_v8 = vcombine.low %v3396_v2, %v3396_v2 }
  0x57   :  { %2636 = vmatprep.mubr.msk.bf16.mxu1 %vm2992_vm2, %v2991_v1  ;;  %2670 = vmatprep.mubr.msk.bf16.mxu0 %vm2992_vm2, %v2991_v1 }
  0x58   :  { %v1022_v39 = vrot.slane %v1020_v30, 3  ;;  %v1025_v40 = vrot.slane %v1023_v31, 4  ;;  %v2304_v31 = vcombine.low %v3286_v63, %v3306_v20  ;;  %v1083_v11 = vshrl.u32 %v2317_v8, 16 }
  0x5a   :  { %v1026_v43 = vor.u32 %v1025_v40, %v1022_v39  ;;  %v836_v39 = vrot.slane %v2304_v31, 3 }
  0x5c   :  { %v1027_v52 = vsel %vm1001_vm6, %v1017_v29, %v1026_v43 }
  0x5e   :  { %2637 = vmatmul.mubr.msk.bf16.gmra.mxu1 %vm120_vm1, %v412_v41  ;;  %2671 = vmatmul.mubr.msk.bf16.gmra.mxu0 %vm120_vm1, %v595_v42  ;;  %v1525_v41 = vsel %vm148_vm0, %v2346_v32, 0  ;;  %v828_v42 = vrot.slane %v2300_v33, 3 }
  0x5f   :  { %2640 = vmatprep.mubr.msk.bf16.mxu1 %vm2992_vm2, %v2991_v1  ;;  %2674 = vmatprep.mubr.msk.bf16.mxu0 %vm2992_vm2, %v2991_v1 }
  0x60   :  { %v829_v50 = vsel %vm822_vm5, %v826_v27, %v828_v42  ;;  %v831_v5 = vsel %vm822_vm5, %v828_v42, %v830_v57  ;;  %v1065_v42 = vshrl.u32 %v2304_v31, 16 }
  0x66   :  { %2641 = vmatmul.mubr.msk.bf16.gmra.mxu1 %vm120_vm1, %v420_v53  ;;  %2675 = vmatmul.mubr.msk.bf16.gmra.mxu0 %vm120_vm1, %v597_v56  ;;  %v1031_v53 = vrot.slane %v1029_v44, 3  ;;  %v1034_v56 = vrot.slane %v1032_v48, 4 }
  0x67   :  { %2678 = vmatprep.mubr.msk.bf16.mxu0 %vm2992_vm2, %v2991_v1  ;;  %2684 = vmatprep.mubr.msk.bf16.mxu1 %vm2992_vm2, %v2991_v1 }
  0x68   :  { %v1035_v58 = vor.u32 %v1034_v56, %v1031_v53 }
  0x6a   :  { %v1036_v6 = vsel %vm1001_vm6, %v1026_v43, %v1035_v58  ;;  %v1045_v18 = vsel %vm1001_vm6, %v1035_v58, %v1044_v10  ;;  %v1068_v43 = vshll.u32 %v2304_v31, 16 }
  0x6e   :  { %2679 = vmatmul.mubr.msk.bf16.gmra.mxu0 %vm120_vm1, %v599_v16  ;;  %2685 = vmatmul.mubr.msk.bf16.vlgmr.msra.gmra.mxu1 %vm120_vm1, %v825_v17  ;;  %v2303_v16 = vcombine.low %v3260_v46, %v3281_v59  ;;  %v833_v17 = vsel %vm822_vm5, %v830_v57, %v832_v9  ;;  %v3571_v46 = vld [vmem:[%s3931_s0 + $0x44] sm:$0xff]   ;;  %v3591_v59 = vld [vmem:[%s3931_s0 + $0x4c] sm:$0xff]  }
  0x6f   :  { %2688 = vmatprep.mubr.msk.bf16.mxu1 %vm2992_vm2, %v2991_v1  ;;  %2722 = vmatprep.mubr.msk.bf16.mxu0 %vm2992_vm2, %v2991_v1 }
  0x70   :  { %2759 = vmatpush3.bf16.msra.mxu1 %v1283_v26  ;;  %v1052_v26 = vrot.slane %v1050_v15, 4  ;;  %v834_v27 = vrot.slane %v2303_v16, 3  ;;  %v1056_v29 = vshrl.u32 %v2303_v16, 16  ;;  %v1059_v30 = vshll.u32 %v2303_v16, 16 }
  0x71   :  { %2834 = vmatprep.subr.bf16.mxu1 %v2991_v1  ;;  %v1086_v15 = vshll.u32 %v2317_v8, 16 }
  0x72   :  { %v1053_v28 = vor.u32 %v1052_v26, %v1049_v19  ;;  %v835_v32 = vsel %vm822_vm5, %v832_v9, %v834_v27  ;;  %v837_v48 = vsel %vm822_vm5, %v834_v27, %v836_v39  ;;  %v1408_v27 = vld [vmem:[%s3931_s0 + $0xc] sm:$0xc] }
  0x73   :  { %v1088_v19 = vrot.slane %v1086_v15, 4 }
  0x74   :  { %v1054_v33 = vsel %vm1001_vm6, %v1044_v10, %v1053_v28 }
  0x76   :  { %2689 = vmatmul.mubr.msk.bf16.gmra.mxu1 %vm120_vm1, %v827_v37  ;;  %2723 = vmatmul.mubr.msk.bf16.vlgmr.msra.gmra.mxu0 %vm120_vm1, %v1018_v38  ;;  %v1058_v37 = vrot.slane %v1056_v29, 3  ;;  %v1061_v38 = vrot.slane %v1059_v30, 4  ;;  %v2366_v29 = vld [vmem:[%s3932_s1 + $0x1c] sm:$0xf] }
  0x77   :  { %2797 = vmatpush3.bf16.msra.mxu0 %v1525_v41  ;;  %2692 = vmatprep.mubr.msk.bf16.mxu1 %vm2992_vm2, %v2991_v1  ;;  %v3381_v41 = vld [vmem:[%s3931_s0 + $0x48] sm:$0xf] }
  0x78   :  { %2726 = vmatprep.mubr.msk.bf16.mxu0 %vm2992_vm2, %v2991_v1  ;;  %2872 = vmatprep.subr.bf16.mxu0 %v2991_v1  ;;  %v1062_v40 = vor.u32 %v1061_v38, %v1058_v37  ;;  %v2305_v44 = vcombine.low %v3311_v21, %v3381_v41 }
  0x7a   :  { %v1063_v49 = vsel %vm1001_vm6, %v1053_v28, %v1062_v40  ;;  %v838_v53 = vrot.slane %v2305_v44, 3  ;;  %v1074_v57 = vshrl.u32 %v2305_v44, 16  ;;  %v1077_v58 = vshll.u32 %v2305_v44, 16  ;;  %v3425_v28 = vld [vmem:[%s3931_s0 + $0x10] sm:$0xf] }
  0x7b   :  { %v3432_v31 = vcombine.low %v1408_v27, %v3425_v28 }
  0x7c   :  { %v839_v3 = vsel %vm822_vm5, %v836_v39, %v838_v53  ;;  %v1079_v7 = vrot.slane %v1077_v58, 4  ;;  %v2377_v39 = vld [vmem:[%s3932_s1 + $0x20] sm:$0xf] }
  0x7d   :  { %v1478_v37 = vrot.slane %v3432_v31, 2 }
  0x7e   :  { %2693 = vmatmul.mubr.msk.bf16.gmra.mxu1 %vm120_vm1, %v829_v50  ;;  %2727 = vmatmul.mubr.msk.bf16.gmra.mxu0 %vm120_vm1, %v1027_v52  ;;  %v1067_v50 = vrot.slane %v1065_v42, 3  ;;  %v1070_v52 = vrot.slane %v1068_v43, 4  ;;  %v3475_v43 = vld [vmem:[%s3931_s0 + $0x24] sm:$0xff]  }
  0x7f   :  { %2696 = vmatprep.mubr.msk.bf16.mxu1 %vm2992_vm2, %v2991_v1  ;;  %2730 = vmatprep.mubr.msk.bf16.mxu0 %vm2992_vm2, %v2991_v1 }
  0x80   :  { %v1071_v56 = vor.u32 %v1070_v52, %v1067_v50 }
  0x82   :  { %v1072_v4 = vsel %vm1001_vm6, %v1062_v40, %v1071_v56  ;;  %v1481_v40 = vrot.slane %v3458_v54, 2 }
  0x86   :  { %2697 = vmatmul.mubr.msk.bf16.gmra.mxu1 %vm120_vm1, %v831_v5  ;;  %2731 = vmatmul.mubr.msk.bf16.gmra.mxu0 %vm120_vm1, %v1036_v6  ;;  %v2946_v5 = vld [vmem:[%s3931_s0 + $0x4c] ss:$0 sps:$4 sm:$0x77]   ;;  %v1076_v6 = vrot.slane %v1074_v57, 3  ;;  %v1485_v57 = vrot.slane %v3499_v13, 2 }
  0x87   :  { %2700 = vmatprep.mubr.msk.bf16.mxu1 %vm2992_vm2, %v2991_v1  ;;  %2734 = vmatprep.mubr.msk.bf16.mxu0 %vm2992_vm2, %v2991_v1  ;;  %v840_v9 = vrot.slane %v2946_v5, 3 }
  0x88   :  { %v1080_v10 = vor.u32 %v1079_v7, %v1076_v6 }
  0x89   :  { %v841_v16 = vsel %vm822_vm5, %v838_v53, %v840_v9  ;;  %v1487_v9 = vrot.slane %v3523_v24, 2 }
  0x8b   :  { %v1488_v34 = vsel %vm1477_vm7, %v1485_v57, %v1487_v9 }
  0x8e   :  { %2701 = vmatmul.mubr.msk.bf16.gmra.mxu1 %vm120_vm1, %v833_v17  ;;  %2735 = vmatmul.mubr.msk.bf16.gmra.mxu0 %vm120_vm1, %v1045_v18  ;;  %v1081_v17 = vsel %vm1001_vm6, %v1071_v56, %v1080_v10  ;;  %v1085_v18 = vrot.slane %v1083_v11, 3 }
  0x8f   :  { %2704 = vmatprep.mubr.msk.bf16.mxu1 %vm2992_vm2, %v2991_v1  ;;  %2738 = vmatprep.mubr.msk.bf16.mxu0 %vm2992_vm2, %v2991_v1 }
  0x90   :  { %v1089_v26 = vor.u32 %v1088_v19, %v1085_v18 }
  0x92   :  { %v1090_v30 = vsel %vm1001_vm6, %v1080_v10, %v1089_v26  ;;  %v1489_v26 = vrot.slane %v3547_v35, 2 }
  0x94   :  { %v1490_v45 = vsel %vm1477_vm7, %v1487_v9, %v1489_v26 }
  0x96   :  { %2705 = vmatmul.mubr.msk.bf16.gmra.mxu1 %vm120_vm1, %v835_v32  ;;  %2739 = vmatmul.mubr.msk.bf16.gmra.mxu0 %vm120_vm1, %v1054_v33  ;;  %v3437_v32 = vld [vmem:[%s3931_s0 + $0x14] sm:$0xff]   ;;  %v1774_v33 = vsel %vm148_vm0, %v2366_v29, 0 }
  0x97   :  { %2708 = vmatprep.mubr.msk.bf16.mxu1 %vm2992_vm2, %v2991_v1  ;;  %2742 = vmatprep.mubr.msk.bf16.mxu0 %vm2992_vm2, %v2991_v1  ;;  %v1479_v38 = vrot.slane %v3437_v32, 2  ;;  %v1666_v20 = vshrl.u32 %v3437_v32, 16  ;;  %v1669_v21 = vshll.u32 %v3437_v32, 16 }
  0x99   :  { %v1480_v51 = vsel %vm1477_vm7, %v1478_v37, %v1479_v38  ;;  %v1482_v42 = vsel %vm1477_vm7, %v1479_v38, %v1481_v40 }
  0x9e   :  { %2709 = vmatmul.mubr.msk.bf16.gmra.mxu1 %vm120_vm1, %v837_v48  ;;  %2743 = vmatmul.mubr.msk.bf16.gmra.mxu0 %vm120_vm1, %v1063_v49 }
  0x9f   :  { %2712 = vmatprep.mubr.msk.bf16.mxu1 %vm2992_vm2, %v2991_v1  ;;  %2746 = vmatprep.mubr.msk.bf16.mxu0 %vm2992_vm2, %v2991_v1 }
  0xa6   :  { %2713 = vmatmul.mubr.msk.bf16.gmra.mxu1 %vm120_vm1, %v839_v3  ;;  %2747 = vmatmul.mubr.msk.bf16.gmra.mxu0 %vm120_vm1, %v1072_v4 }
  0xa7   :  { %2716 = vmatprep.mubr.msk.bf16.mxu1 %vm2992_vm2, %v2991_v1  ;;  %2750 = vmatprep.mubr.msk.bf16.mxu0 %vm2992_vm2, %v2991_v1 }
  0xae   :  { %2717 = vmatmul.mubr.msk.bf16.gmra.mxu1 %vm120_vm1, %v841_v16  ;;  %2751 = vmatmul.mubr.msk.bf16.gmra.mxu0 %vm120_vm1, %v1081_v17 }
  0xaf   :  { %2754 = vmatprep.mubr.msk.bf16.mxu0 %vm2992_vm2, %v2991_v1  ;;  %2760 = vmatprep.mubr.msk.bf16.mxu1 %vm2992_vm2, %v2991_v1 }
  0xb6   :  { %2755 = vmatmul.mubr.msk.bf16.gmra.mxu0 %vm120_vm1, %v1090_v30  ;;  %2761 = vmatmul.mubr.msk.bf16.vlgmr.msra.gmra.mxu1 %vm120_vm1, %v2328_v55  ;;  %v1952_v55 = vsel %vm148_vm0, %v2377_v39, 0 }
  0xb7   :  { %2764 = vmatprep.mubr.msk.bf16.mxu1 %vm2992_vm2, %v2991_v1  ;;  %2798 = vmatprep.mubr.msk.bf16.mxu0 %vm2992_vm2, %v2991_v1 }
  0xb8   :  { %2835 = vmatpush3.bf16.msra.mxu1 %v1774_v33 }
  0xbe   :  { %2765 = vmatmul.mubr.msk.bf16.gmra.mxu1 %vm120_vm1, %v2329_v62  ;;  %2799 = vmatmul.mubr.msk.bf16.vlgmr.msra.gmra.mxu0 %vm120_vm1, %v1480_v51  ;;  %v1483_v62 = vrot.slane %v3475_v43, 2 }
  0xbf   :  { %2873 = vmatpush3.bf16.msra.mxu0 %v1952_v55  ;;  %2768 = vmatprep.mubr.msk.bf16.mxu1 %vm2992_vm2, %v2991_v1  ;;  %v1491_v55 = vrot.slane %v3571_v46, 2 }
  0xc0   :  { %2802 = vmatprep.mubr.msk.bf16.mxu0 %vm2992_vm2, %v2991_v1  ;;  %v1484_v12 = vsel %vm1477_vm7, %v1481_v40, %v1483_v62  ;;  %v1486_v23 = vsel %vm1477_vm7, %v1483_v62, %v1485_v57  ;;  %v1658_v57 = vshrl.u32 %v3432_v31, 16 }
  0xc2   :  { %v1660_v9 = vrot.slane %v1658_v57, 2 }
  0xc6   :  { %v3477_v60 = vpop.f32.mrf.mxu0  ;;  %v3479_v61 = vpop.f32.mrf.mxu1  ;;  %2769 = vmatmul.mubr.msk.bf16.gmra.mxu1 %vm120_vm1, %v2330_v14  ;;  %2803 = vmatmul.mubr.msk.bf16.gmra.mxu0 %vm120_vm1, %v1482_v42 }
  0xc7   :  { %2772 = vmatprep.mubr.msk.bf16.mxu1 %vm2992_vm2, %v2991_v1  ;;  %2806 = vmatprep.mubr.msk.bf16.mxu0 %vm2992_vm2, %v2991_v1 }
  0xc8   :  { %v2572_v44 = vpop.f32.mrf.mxu0  ;;  %v2592_v48 = vpop.f32.mrf.mxu1 }
  0xca   :  { %v3491_v49 = vpop.f32.mrf.mxu0  ;;  %v3493_v50 = vpop.f32.mrf.mxu1 }
  0xcc   :  { %v2573_v14 = vpop.f32.mrf.mxu0  ;;  %v2593_v52 = vpop.f32.mrf.mxu1 }
  0xcd   :  { %v1493_v52 = vrot.slane %v3591_v59, 2 }
  0xce   :  { %v3501_v53 = vpop.f32.mrf.mxu0  ;;  %v3503_v56 = vpop.f32.mrf.mxu1  ;;  %2773 = vmatmul.mubr.msk.bf16.gmra.mxu1 %vm120_vm1, %v2331_v25  ;;  %2807 = vmatmul.mubr.msk.bf16.gmra.mxu0 %vm120_vm1, %v1484_v12 }
  0xcf   :  { %2776 = vmatprep.mubr.msk.bf16.mxu1 %vm2992_vm2, %v2991_v1  ;;  %2810 = vmatprep.mubr.msk.bf16.mxu0 %vm2992_vm2, %v2991_v1 }
  0xd0   :  { %v2576_v58 = vpop.f32.mrf.mxu0  ;;  %v2596_v3 = vpop.f32.mrf.mxu1 }
  0xd1   :  { %v1661_v58 = vshll.u32 %v3432_v31, 16  ;;  %v2336_v31 = vcombine.low %v3381_v41, %v3396_v2  ;;  %v1675_v2 = vshrl.u32 %v3458_v54, 16 }
  0xd2   :  { %v3515_v4 = vpop.f32.mrf.mxu0  ;;  %v3517_v5 = vpop.f32.mrf.mxu1 }
  0xd4   :  { %v2577_v25 = vpop.f32.mrf.mxu0  ;;  %v2597_v6 = vpop.f32.mrf.mxu1 }
  0xd6   :  { %v3525_v7 = vpop.f32.mrf.mxu0  ;;  %v3527_v8 = vpop.f32.mrf.mxu1  ;;  %2777 = vmatmul.mubr.msk.bf16.gmra.mxu1 %vm120_vm1, %v2332_v36  ;;  %2811 = vmatmul.mubr.msk.bf16.gmra.mxu0 %vm120_vm1, %v1486_v23 }
  0xd7   :  { %2780 = vmatprep.mubr.msk.bf16.mxu1 %vm2992_vm2, %v2991_v1  ;;  %2814 = vmatprep.mubr.msk.bf16.mxu0 %vm2992_vm2, %v2991_v1 }
  0xd8   :  { %v2580_v10 = vpop.f32.mrf.mxu0  ;;  %v2600_v11 = vpop.f32.mrf.mxu1 }
  0xd9   :  { %v1663_v10 = vrot.slane %v1661_v58, 3 }
  0xda   :  { %v3539_v15 = vpop.f32.mrf.mxu0  ;;  %v3541_v16 = vpop.f32.mrf.mxu1 }
  0xdb   :  { %v1664_v41 = vor.u32 %v1663_v10, %v1660_v9 }
  0xdc   :  { %v2581_v36 = vpop.f32.mrf.mxu0  ;;  %v2601_v17 = vpop.f32.mrf.mxu1 }
  0xdd   :  { %v2966_v36 = vld [vmem:[%s3931_s0 + $0x54] ss:$0 sps:$4 sm:$0x33]   ;;  %v1668_v17 = vrot.slane %v1666_v20, 2 }
  0xde   :  { %v3549_v18 = vpop.f32.mrf.mxu0  ;;  %v3551_v19 = vpop.f32.mrf.mxu1  ;;  %2781 = vmatmul.mubr.msk.bf16.gmra.mxu1 %vm120_vm1, %v2333_v47  ;;  %2815 = vmatmul.mubr.msk.bf16.gmra.mxu0 %vm120_vm1, %v1488_v34 }
  0xdf   :  { %2784 = vmatprep.mubr.msk.bf16.mxu1 %vm2992_vm2, %v2991_v1  ;;  %2818 = vmatprep.mubr.msk.bf16.mxu0 %vm2992_vm2, %v2991_v1 }
  0xe0   :  { %v2584_v27 = vpop.f32.mrf.mxu0  ;;  %v2604_v29 = vpop.f32.mrf.mxu1 }
  0xe2   :  { %v3563_v30 = vpop.f32.mrf.mxu0  ;;  %v3565_v33 = vpop.f32.mrf.mxu1 }
  0xe4   :  { %v2585_v47 = vpop.f32.mrf.mxu0  ;;  %v2605_v37 = vpop.f32.mrf.mxu1 }
  0xe6   :  { %v3573_v38 = vpop.f32.mrf.mxu0  ;;  %v485_v39 = vpop.f32.mrf.mxu1  ;;  %2785 = vmatmul.mubr.msk.bf16.gmra.mxu1 %vm120_vm1, %v2334_v0  ;;  %2819 = vmatmul.mubr.msk.bf16.gmra.mxu0 %vm120_vm1, %v1490_v45  ;;  %v1492_v0 = vsel %vm1477_vm7, %v1489_v26, %v1491_v55  ;;  %v1671_v26 = vrot.slane %v1669_v21, 3 }
  0xe7   :  { %v556_v51 = vadd.f32 %v485_v39, %v3477_v60  ;;  %2788 = vmatprep.mubr.msk.bf16.mxu1 %vm2992_vm2, %v2991_v1  ;;  %2822 = vmatprep.mubr.msk.bf16.mxu0 %vm2992_vm2, %v2991_v1 }
  0xe8   :  { %v2588_v40 = vpop.f32.mrf.mxu0  ;;  %v2610_v42 = vpop.f32.mrf.mxu1 }
  0xe9   :  { %v1899_v40 = vld [vmem:[%s3931_s0 + $0xc] sm:$0x8] }
  0xea   :  { %v3586_v62 = vpop.f32.mrf.mxu0  ;;  %v488_v44 = vpop.f32.mrf.mxu1 }
  0xeb   :  { %v557_v63 = vadd.f32 %v488_v44, %v3491_v49 }
  0xec   :  { %v2589_v60 = vpop.f32.mrf.mxu0  ;;  %v2611_v48 = vpop.f32.mrf.mxu1 }
  0xed   :  { %v2378_v48 = vcombine.low %v1899_v40, %v3425_v28  ;;  %v1906_v28 = vrot.slane %v3437_v32, 3 }
  0xee   :  { %v493_v12 = vpop.f32.mrf.mxu1  ;;  %v664_v14 = vpop.f32.mrf.mxu0  ;;  %2789 = vmatmul.mubr.msk.bf16.gmra.mxu1 %vm120_vm1, %v2335_v22  ;;  %2823 = vmatmul.mubr.msk.bf16.gmra.mxu0 %vm120_vm1, %v1492_v0 }
  0xef   :  { %v558_v49 = vadd.f32 %v493_v12, %v3501_v53  ;;  %v3604_v3 = vadd.f32 %v664_v14, %v556_v51  ;;  %2792 = vmatprep.mubr.msk.bf16.mxu1 %vm2992_vm2, %v2991_v1  ;;  %2826 = vmatprep.mubr.msk.bf16.mxu0 %vm2992_vm2, %v2991_v1  ;;  %v1494_v53 = vsel %vm1477_vm7, %v1491_v55, %v1493_v52  ;;  %v1495_v51 = vrot.slane %v2966_v36, 2 }
  0xf0   :  { %v2614_v22 = vpop.f32.mrf.mxu1  ;;  %v2648_v23 = vpop.f32.mrf.mxu0  ;;  %v1672_v55 = vor.u32 %v1671_v26, %v1668_v17 }
  0xf1   :  { %v1496_v57 = vsel %vm1477_vm7, %v1493_v52, %v1495_v51  ;;  %v1684_v52 = vshrl.u32 %v3475_v43, 16 }
  0xf2   :  { %v496_v25 = vpop.f32.mrf.mxu1  ;;  %v667_v6 = vpop.f32.mrf.mxu0  ;;  %v1673_v58 = vsel %vm1656_vm8, %v1664_v41, %v1672_v55 }
  0xf3   :  { %v559_v11 = vadd.f32 %v496_v25, %v3515_v4  ;;  %v3616_v34 = vadd.f32 %v667_v6, %v557_v63  ;;  %v1678_v4 = vshll.u32 %v3458_v54, 16  ;;  %v1905_v25 = vrot.slane %v2378_v48, 3 }
  0xf4   :  { %v2615_v27 = vpop.f32.mrf.mxu1  ;;  %v2649_v29 = vpop.f32.mrf.mxu0  ;;  %v1686_v26 = vrot.slane %v1684_v52, 2 }
  0xf5   :  { %v1680_v60 = vrot.slane %v1678_v4, 3  ;;  %v1696_v4 = vshll.u32 %v3499_v13, 16 }
  0xf6   :  { %v501_v45 = vpop.f32.mrf.mxu1  ;;  %v672_v47 = vpop.f32.mrf.mxu0  ;;  %2793 = vmatmul.mubr.msk.bf16.gmra.mxu1 %vm120_vm1, %v2336_v31  ;;  %2827 = vmatmul.mubr.msk.bf16.gmra.mxu0 %vm120_vm1, %v1494_v53  ;;  %v1687_v31 = vshll.u32 %v3475_v43, 16 }
  0xf7   :  { %v560_v37 = vadd.f32 %v501_v45, %v3525_v7  ;;  %v3626_v39 = vadd.f32 %v672_v47, %v558_v49  ;;  %2830 = vmatprep.mubr.msk.bf16.mxu0 %vm2992_vm2, %v2991_v1  ;;  %2836 = vmatprep.mubr.msk.bf16.mxu1 %vm2992_vm2, %v2991_v1  ;;  %v1677_v7 = vrot.slane %v1675_v2, 2  ;;  %v1693_v2 = vshrl.u32 %v3499_v13, 16 }
  0xf8   :  { %v2618_v42 = vpop.f32.mrf.mxu1  ;;  %v2652_v44 = vpop.f32.mrf.mxu0  ;;  %v1689_v27 = vrot.slane %v1687_v31, 3 }
  0xf9   :  { %v1681_v23 = vor.u32 %v1680_v60, %v1677_v7  ;;  %v1698_v7 = vrot.slane %v1696_v4, 3 }
  0xfa   :  { %v504_v63 = vpop.f32.mrf.mxu1  ;;  %v675_v0 = vpop.f32.mrf.mxu0 }
  0xfb   :  { %v561_v12 = vadd.f32 %v504_v63, %v3539_v15  ;;  %v3637_v14 = vadd.f32 %v675_v0, %v559_v11  ;;  %v1682_v32 = vsel %vm1656_vm8, %v1672_v55, %v1681_v23  ;;  %v1908_v55 = vrot.slane %v3458_v54, 3 }
  0xfc   :  { %v2619_v49 = vpop.f32.mrf.mxu1  ;;  %v2653_v20 = vpop.f32.mrf.mxu0  ;;  %v1695_v0 = vrot.slane %v1693_v2, 2 }
  0xfe   :  { %v509_v21 = vpop.f32.mrf.mxu1  ;;  %v680_v22 = vpop.f32.mrf.mxu0  ;;  %2831 = vmatmul.mubr.msk.bf16.gmra.mxu0 %vm120_vm1, %v1496_v57  ;;  %2837 = vmatmul.mubr.msk.bf16.vlgmr.msra.gmra.mxu1 %vm120_vm1, %v1673_v58  ;;  %v1699_v54 = vor.u32 %v1698_v7, %v1695_v0 }
  0xff   :  { %v562_v15 = vadd.f32 %v509_v21, %v3549_v18  ;;  %v3645_v6 = vadd.f32 %v680_v22, %v560_v37  ;;  %2840 = vmatprep.mubr.msk.bf16.mxu1 %vm2992_vm2, %v2991_v1  ;;  %2874 = vmatprep.mubr.msk.bf16.mxu0 %vm2992_vm2, %v2991_v1  ;;  %v1907_v18 = vsel %vm822_vm5, %v1905_v25, %v1906_v28  ;;  %v1702_v22 = vshrl.u32 %v3523_v24, 16 }
 0x100   :  { %v2622_v53 = vpop.f32.mrf.mxu1  ;;  %v2656_v9 = vpop.f32.mrf.mxu0 }
 0x102   :  { %v512_v10 = vpop.f32.mrf.mxu1  ;;  %v683_v11 = vpop.f32.mrf.mxu0 }
 0x103   :  { %v563_v36 = vadd.f32 %v512_v10, %v3563_v30  ;;  %v3656_v17 = vadd.f32 %v683_v11, %v561_v12  ;;  %v1690_v30 = vor.u32 %v1689_v27, %v1686_v26  ;;  %v1909_v12 = vsel %vm822_vm5, %v1906_v28, %v1908_v55 }
 0x104   :  { %v2623_v29 = vpop.f32.mrf.mxu1  ;;  %v2657_v45 = vpop.f32.mrf.mxu0  ;;  %v1704_v10 = vrot.slane %v1702_v22, 2  ;;  %v1711_v27 = vshrl.u32 %v3547_v35, 16 }
 0x105   :  { %v1691_v48 = vsel %vm1656_vm8, %v1681_v23, %v1690_v30  ;;  %v1705_v23 = vshll.u32 %v3523_v24, 16  ;;  %v1700_v31 = vsel %vm1656_vm8, %v1690_v30, %v1699_v54  ;;  %v1714_v29 = vshll.u32 %v3547_v35, 16 }
 0x106   :  { %v517_v47 = vpop.f32.mrf.mxu1  ;;  %v688_v41 = vpop.f32.mrf.mxu0  ;;  %2841 = vmatmul.mubr.msk.bf16.gmra.mxu1 %vm120_vm1, %v1682_v32  ;;  %2875 = vmatmul.mubr.msk.bf16.vlgmr.msra.gmra.mxu0 %vm120_vm1, %v1907_v18 }
 0x107   :  { %v564_v37 = vadd.f32 %v517_v47, %v3573_v38  ;;  %v3663_v51 = vadd.f32 %v688_v41, %v562_v15  ;;  %2844 = vmatprep.mubr.msk.bf16.mxu1 %vm2992_vm2, %v2991_v1  ;;  %2878 = vmatprep.mubr.msk.bf16.mxu0 %vm2992_vm2, %v2991_v1  ;;  %v1707_v11 = vrot.slane %v1705_v23, 3 }
 0x108   :  { %v2626_v40 = vpop.f32.mrf.mxu1  ;;  %v2660_v42 = vpop.f32.mrf.mxu0 }
 0x109   :  { %v1708_v47 = vor.u32 %v1707_v11, %v1704_v10  ;;  %v1716_v40 = vrot.slane %v1714_v29, 3 }
 0x10a   :  { %v520_v44 = vpop.f32.mrf.mxu1  ;;  %v691_v63 = vpop.f32.mrf.mxu0 }
 0x10b   :  { %v565_v60 = vadd.f32 %v520_v44, %v3586_v62  ;;  %v3671_v38 = vadd.f32 %v691_v63, %v563_v36  ;;  %v1910_v62 = vrot.slane %v3475_v43, 3  ;;  %v1709_v44 = vsel %vm1656_vm8, %v1699_v54, %v1708_v47 }
 0x10c   :  { %v2627_v57 = vpop.f32.mrf.mxu1  ;;  %v2661_v58 = vpop.f32.mrf.mxu0 }
 0x10d   :  { %v1911_v9 = vsel %vm822_vm5, %v1908_v55, %v1910_v62  ;;  %v1713_v55 = vrot.slane %v1711_v27, 2  ;;  %v1914_v57 = vrot.slane %v3523_v24, 3  ;;  %v1720_v58 = vshrl.u32 %v3571_v46, 16 }
 0x10e   :  { %v525_v49 = vpop.f32.mrf.mxu1  ;;  %v696_v20 = vpop.f32.mrf.mxu0  ;;  %2845 = vmatmul.mubr.msk.bf16.gmra.mxu1 %vm120_vm1, %v1691_v48  ;;  %2879 = vmatmul.mubr.msk.bf16.gmra.mxu0 %vm120_vm1, %v1909_v12 }
 0x10f   :  { %v3677_v21 = vadd.f32 %v696_v20, %v564_v37  ;;  %2848 = vmatprep.mubr.msk.bf16.mxu1 %vm2992_vm2, %v2991_v1  ;;  %2882 = vmatprep.mubr.msk.bf16.mxu0 %vm2992_vm2, %v2991_v1  ;;  %v566_v43 = vadd.f32 %v525_v49, %v3479_v61  ;;  %v1912_v61 = vrot.slane %v3499_v13, 3 }
 0x110   :  { %v2630_v25 = vpop.f32.mrf.mxu1  ;;  %v2664_v28 = vpop.f32.mrf.mxu0 }
 0x111   :  { %v1913_v63 = vsel %vm822_vm5, %v1910_v62, %v1912_v61  ;;  %v1915_v28 = vsel %vm822_vm5, %v1912_v61, %v1914_v57 }
 0x112   :  { %v528_v15 = vpop.f32.mrf.mxu1  ;;  %v699_v52 = vpop.f32.mrf.mxu0 }
 0x113   :  { %v3687_v53 = vadd.f32 %v699_v52, %v565_v60  ;;  %v567_v4 = vadd.f32 %v528_v15, %v3493_v50  ;;  %v1717_v50 = vor.u32 %v1716_v40, %v1713_v55  ;;  %v1722_v15 = vrot.slane %v1720_v58, 2 }
 0x114   :  { %v2631_v32 = vpop.f32.mrf.mxu1  ;;  %v2665_v18 = vpop.f32.mrf.mxu0 }
 0x115   :  { %v1718_v23 = vsel %vm1656_vm8, %v1708_v47, %v1717_v50  ;;  %v1732_v32 = vshll.u32 %v3591_v59, 16 }
 0x116   :  { %v533_v36 = vpop.f32.mrf.mxu1  ;;  %v704_v26 = vpop.f32.mrf.mxu0  ;;  %2849 = vmatmul.mubr.msk.bf16.gmra.mxu1 %vm120_vm1, %v1700_v31  ;;  %2883 = vmatmul.mubr.msk.bf16.gmra.mxu0 %vm120_vm1, %v1911_v9 }
 0x117   :  { %v3695_v45 = vadd.f32 %v704_v26, %v566_v43  ;;  %2852 = vmatprep.mubr.msk.bf16.mxu1 %vm2992_vm2, %v2991_v1  ;;  %2886 = vmatprep.mubr.msk.bf16.mxu0 %vm2992_vm2, %v2991_v1  ;;  %v568_v60 = vadd.f32 %v533_v36, %v3503_v56  ;;  %v1723_v56 = vshll.u32 %v3571_v46, 16 }
 0x118   :  { %v2634_v41 = vpop.f32.mrf.mxu1  ;;  %v2668_v2 = vpop.f32.mrf.mxu0 }
 0x119   :  { %v1725_v52 = vrot.slane %v1723_v56, 3  ;;  %v1734_v41 = vrot.slane %v1732_v32, 3 }
 0x11a   :  { %v536_v37 = vpop.f32.mrf.mxu1  ;;  %v707_v30 = vpop.f32.mrf.mxu0 }
 0x11b   :  { %v3703_v42 = vadd.f32 %v707_v30, %v567_v4  ;;  %v569_v54 = vadd.f32 %v536_v37, %v3517_v5  ;;  %v1729_v5 = vshrl.u32 %v3591_v59, 16  ;;  %v1726_v43 = vor.u32 %v1725_v52, %v1722_v15  ;;  %v3744_v30 = vld [vmem:[%s3931_s0 + $0x54] ss:$0 sps:$4 sm:$0x77]  }
 0x11c   :  { %v2635_v0 = vpop.f32.mrf.mxu1  ;;  %v2669_v7 = vpop.f32.mrf.mxu0 }
 0x11d   :  { %v1731_v61 = vrot.slane %v1729_v5, 2  ;;  %v1727_v4 = vsel %vm1656_vm8, %v1717_v50, %v1726_v43  ;;  %v1918_v0 = vrot.slane %v3571_v46, 3 }
 0x11e   :  { %v541_v48 = vpop.f32.mrf.mxu1  ;;  %v712_v13 = vpop.f32.mrf.mxu0  ;;  %2853 = vmatmul.mubr.msk.bf16.gmra.mxu1 %vm120_vm1, %v1709_v44  ;;  %2887 = vmatmul.mubr.msk.bf16.gmra.mxu0 %vm120_vm1, %v1913_v63 }
 0x11f   :  { %v3710_v12 = vadd.f32 %v712_v13, %v568_v60  ;;  %2856 = vmatprep.mubr.msk.bf16.mxu1 %vm2992_vm2, %v2991_v1  ;;  %2890 = vmatprep.mubr.msk.bf16.mxu0 %vm2992_vm2, %v2991_v1  ;;  %v570_v9 = vadd.f32 %v541_v48, %v3527_v8  ;;  %v1916_v8 = vrot.slane %v3547_v35, 3  ;;  %v1735_v63 = vor.u32 %v1734_v41, %v1731_v61 }
 0x120   :  { %v2638_v49 = vpop.f32.mrf.mxu1  ;;  %v2672_v20 = vpop.f32.mrf.mxu0  ;;  %v1741_v48 = vshll.u32 %v3744_v30, 16 }
 0x121   :  { %v1917_v37 = vsel %vm822_vm5, %v1914_v57, %v1916_v8  ;;  %v1736_v56 = vsel %vm1656_vm8, %v1726_v43, %v1735_v63 }
 0x122   :  { %v544_v62 = vpop.f32.mrf.mxu1  ;;  %v715_v22 = vpop.f32.mrf.mxu0 }
 0x123   :  { %v3721_v25 = vadd.f32 %v715_v22, %v569_v54  ;;  %v571_v27 = vadd.f32 %v544_v62, %v3541_v16  ;;  %v1743_v62 = vrot.slane %v1741_v48, 3 }
 0x124   :  { %v2639_v31 = vpop.f32.mrf.mxu1  ;;  %v2673_v24 = vpop.f32.mrf.mxu0 }
 0x125   :  { %v1920_v31 = vrot.slane %v3591_v59, 3 }
 0x126   :  { %v549_v10 = vpop.f32.mrf.mxu1  ;;  %v720_v11 = vpop.f32.mrf.mxu0  ;;  %2857 = vmatmul.mubr.msk.bf16.gmra.mxu1 %vm120_vm1, %v1718_v23  ;;  %2891 = vmatmul.mubr.msk.bf16.gmra.mxu0 %vm120_vm1, %v1915_v28 }
 0x127   :  { %v3729_v18 = vadd.f32 %v720_v11, %v570_v9  ;;  %2860 = vmatprep.mubr.msk.bf16.mxu1 %vm2992_vm2, %v2991_v1  ;;  %2894 = vmatprep.mubr.msk.bf16.mxu0 %vm2992_vm2, %v2991_v1  ;;  %v572_v40 = vadd.f32 %v549_v10, %v3551_v19  ;;  %v1738_v19 = vshrl.u32 %v3744_v30, 16  ;;  %v1921_v43 = vsel %vm822_vm5, %v1918_v0, %v1920_v31 }
 0x128   :  { %v2642_v36 = vpop.f32.mrf.mxu1  ;;  %v2676_v26 = vpop.f32.mrf.mxu0 }
 0x129   :  { %v1740_v54 = vrot.slane %v1738_v19, 2 }
 0x12a   :  { %v552_v29 = vpop.f32.mrf.mxu1  ;;  %v723_v47 = vpop.f32.mrf.mxu0 }
 0x12b   :  { %v3737_v2 = vadd.f32 %v723_v47, %v571_v27  ;;  %v573_v57 = vadd.f32 %v552_v29, %v3565_v33 }
 0x12c   :  { %v2643_v35 = vpop.f32.mrf.mxu1  ;;  %v2677_v55 = vpop.f32.mrf.mxu0 }
 0x12e   :  { %v728_v16 = vpop.f32.mrf.mxu0  ;;  %v906_v44 = vpop.f32.mrf.mxu1  ;;  %2861 = vmatmul.mubr.msk.bf16.gmra.mxu1 %vm120_vm1, %v1727_v4  ;;  %2895 = vmatmul.mubr.msk.bf16.gmra.mxu0 %vm120_vm1, %v1917_v37 }
 0x12f   :  { %v3750_v7 = vadd.f32 %v728_v16, %v572_v40  ;;  %v977_v60 = vadd.f32 %v906_v44, %v3604_v3  ;;  %2864 = vmatprep.mubr.msk.bf16.mxu1 %vm2992_vm2, %v2991_v1  ;;  %2898 = vmatprep.mubr.msk.bf16.mxu0 %vm2992_vm2, %v2991_v1  ;;  %v1919_v3 = vsel %vm822_vm5, %v1916_v8, %v1918_v0 }
 0x130   :  { %v2680_v13 = vpop.f32.mrf.mxu0  ;;  %v2686_v50 = vpop.f32.mrf.mxu1 }
 0x132   :  { %v731_v58 = vpop.f32.mrf.mxu0  ;;  %v909_v46 = vpop.f32.mrf.mxu1 }
 0x133   :  { %v3762_v49 = vadd.f32 %v731_v58, %v573_v57  ;;  %v978_v20 = vadd.f32 %v909_v46, %v3616_v34  ;;  %v1744_v34 = vor.u32 %v1743_v62, %v1740_v54 }
 0x134   :  { %v2681_v22 = vpop.f32.mrf.mxu0  ;;  %v2687_v23 = vpop.f32.mrf.mxu1 }
 0x136   :  { %v914_v28 = vpop.f32.mrf.mxu1  ;;  %v1155_v15 = vpop.f32.mrf.mxu0  ;;  %2865 = vmatmul.mubr.msk.bf16.gmra.mxu1 %vm120_vm1, %v1736_v56  ;;  %2899 = vmatmul.mubr.msk.bf16.gmra.mxu0 %vm120_vm1, %v1919_v3 }
 0x137   :  { %v979_v33 = vadd.f32 %v914_v28, %v3626_v39  ;;  %v3768_v52 = vadd.f32 %v1155_v15, %v977_v60  ;;  %2868 = vmatprep.mubr.msk.bf16.mxu1 %vm2992_vm2, %v2991_v1  ;;  %2902 = vmatprep.mubr.msk.bf16.mxu0 %vm2992_vm2, %v2991_v1  ;;  %v1745_v39 = vsel %vm1656_vm8, %v1735_v63, %v1744_v34 }
 0x138   :  { %v2690_v24 = vpop.f32.mrf.mxu1  ;;  %v2724_v9 = vpop.f32.mrf.mxu0 }
 0x13a   :  { %v917_v10 = vpop.f32.mrf.mxu1  ;;  %v1158_v11 = vpop.f32.mrf.mxu0 }
 0x13b   :  { %v980_v5 = vadd.f32 %v917_v10, %v3637_v14  ;;  %v3776_v32 = vadd.f32 %v1158_v11, %v978_v20  ;;  %v1922_v14 = vrot.slane %v3744_v30, 3 }
 0x13c   :  { %v2691_v8 = vpop.f32.mrf.mxu1  ;;  %v2725_v36 = vpop.f32.mrf.mxu0 }
 0x13d   :  { %v1923_v55 = vsel %vm822_vm5, %v1920_v31, %v1922_v14 }
 0x13e   :  { %v922_v26 = vpop.f32.mrf.mxu1  ;;  %v1163_v27 = vpop.f32.mrf.mxu0  ;;  %2869 = vmatmul.mubr.msk.bf16.gmra.mxu1 %vm120_vm1, %v1745_v39  ;;  %2903 = vmatmul.mubr.msk.bf16.gmra.mxu0 %vm120_vm1, %v1921_v43 }
 0x13f   :  { %v981_v59 = vadd.f32 %v922_v26, %v3645_v6  ;;  %v3783_v29 = vadd.f32 %v1163_v27, %v979_v33  ;;  %2906 = vmatprep.mubr.msk.bf16.mxu0 %vm2992_vm2, %v2991_v1 }
 0x140   :  { %v2694_v47 = vpop.f32.mrf.mxu1  ;;  %v2728_v61 = vpop.f32.mrf.mxu0 }
 0x142   :  { %v925_v41 = vpop.f32.mrf.mxu1  ;;  %v1166_v4 = vpop.f32.mrf.mxu0 }
 0x143   :  { %v982_v37 = vadd.f32 %v925_v41, %v3656_v17  ;;  %v3789_v35 = vadd.f32 %v1166_v4, %v980_v5 }
 0x144   :  { %v2695_v40 = vpop.f32.mrf.mxu1  ;;  %v2729_v16 = vpop.f32.mrf.mxu0 }
 0x146   :  { %v930_v6 = vpop.f32.mrf.mxu1  ;;  %v1171_v44 = vpop.f32.mrf.mxu0  ;;  %2907 = vmatmul.mubr.msk.bf16.gmra.mxu0 %vm120_vm1, %v1923_v55 }
 0x147   :  { %v983_v1 = vadd.f32 %v930_v6, %v3663_v51  ;;  %v3794_v63 = vadd.f32 %v1171_v44, %v981_v59 }
 0x148   :  { %v2698_v30 = vpop.f32.mrf.mxu1  ;;  %v2732_v0 = vpop.f32.mrf.mxu0 }
 0x14a   :  { %v933_v60 = vpop.f32.mrf.mxu1  ;;  %v1174_v19 = vpop.f32.mrf.mxu0 }
 0x14b   :  { %v984_v17 = vadd.f32 %v933_v60, %v3671_v38  ;;  %v3797_v48 = vadd.f32 %v1174_v19, %v982_v37 }
 0x14c   :  { %v2699_v13 = vpop.f32.mrf.mxu1  ;;  %v2733_v50 = vpop.f32.mrf.mxu0 }
 0x14e   :  { %v938_v57 = vpop.f32.mrf.mxu1  ;;  %v1179_v58 = vpop.f32.mrf.mxu0 }
 0x14f   :  { %v985_v46 = vadd.f32 %v938_v57, %v3677_v21  ;;  %v3800_v56 = vadd.f32 %v1179_v58, %v983_v1 }
 0x150   :  { %v2702_v3 = vpop.f32.mrf.mxu1  ;;  %v2736_v51 = vpop.f32.mrf.mxu0 }
 0x152   :  { %v941_v20 = vpop.f32.mrf.mxu1  ;;  %v1182_v54 = vpop.f32.mrf.mxu0 }
 0x153   :  { %v986_v62 = vadd.f32 %v941_v20, %v3687_v53  ;;  %v3803_v22 = vadd.f32 %v1182_v54, %v984_v17 }
 0x154   :  { %v2703_v23 = vpop.f32.mrf.mxu1  ;;  %v2737_v38 = vpop.f32.mrf.mxu0 }
 0x156   :  { %v946_v28 = vpop.f32.mrf.mxu1  ;;  %v1187_v15 = vpop.f32.mrf.mxu0 }
 0x157   :  { %v987_v33 = vadd.f32 %v946_v28, %v3695_v45  ;;  %v3806_v34 = vadd.f32 %v1187_v15, %v985_v46 }
 0x158   :  { %v2706_v31 = vpop.f32.mrf.mxu1  ;;  %v2740_v21 = vpop.f32.mrf.mxu0 }
 0x15a   :  { %v949_v24 = vpop.f32.mrf.mxu1  ;;  %v1190_v9 = vpop.f32.mrf.mxu0 }
 0x15b   :  { %v988_v10 = vadd.f32 %v949_v24, %v3703_v42  ;;  %v3809_v11 = vadd.f32 %v1190_v9, %v986_v62 }
 0x15c   :  { %v2707_v5 = vpop.f32.mrf.mxu1  ;;  %v2741_v53 = vpop.f32.mrf.mxu0 }
 0x15e   :  { %v954_v39 = vpop.f32.mrf.mxu1  ;;  %v1195_v43 = vpop.f32.mrf.mxu0 }
 0x15f   :  { %v989_v8 = vadd.f32 %v954_v39, %v3710_v12  ;;  %v3812_v36 = vadd.f32 %v1195_v43, %v987_v33 }
 0x160   :  { %v2710_v26 = vpop.f32.mrf.mxu1  ;;  %v2744_v45 = vpop.f32.mrf.mxu0 }
 0x162   :  { %v957_v27 = vpop.f32.mrf.mxu1  ;;  %v1198_v59 = vpop.f32.mrf.mxu0 }
 0x163   :  { %v990_v14 = vadd.f32 %v957_v27, %v3721_v25  ;;  %v3815_v47 = vadd.f32 %v1198_v59, %v988_v10 }
 0x164   :  { %v2711_v61 = vpop.f32.mrf.mxu1  ;;  %v2745_v42 = vpop.f32.mrf.mxu0 }
 0x166   :  { %v962_v41 = vpop.f32.mrf.mxu1  ;;  %v1203_v4 = vpop.f32.mrf.mxu0 }
 0x167   :  { %v991_v37 = vadd.f32 %v962_v41, %v3729_v18  ;;  %v3818_v55 = vadd.f32 %v1203_v4, %v989_v8 }
 0x168   :  { %v2714_v40 = vpop.f32.mrf.mxu1  ;;  %v2748_v12 = vpop.f32.mrf.mxu0 }
 0x16a   :  { %v965_v16 = vpop.f32.mrf.mxu1  ;;  %v1206_v6 = vpop.f32.mrf.mxu0 }
 0x16b   :  { %v992_v44 = vadd.f32 %v965_v16, %v3737_v2  ;;  %v3821_v1 = vadd.f32 %v1206_v6, %v990_v14 }
 0x16c   :  { %v2715_v30 = vpop.f32.mrf.mxu1  ;;  %v2749_v25 = vpop.f32.mrf.mxu0 }
 0x16e   :  { %v970_v0 = vpop.f32.mrf.mxu1  ;;  %v1211_v60 = vpop.f32.mrf.mxu0 }
 0x16f   :  { %v993_v19 = vadd.f32 %v970_v0, %v3750_v7  ;;  %v3824_v17 = vadd.f32 %v1211_v60, %v991_v37 }
 0x170   :  { %v2718_v13 = vpop.f32.mrf.mxu1  ;;  %v2752_v18 = vpop.f32.mrf.mxu0 }
 0x172   :  { %v973_v50 = vpop.f32.mrf.mxu1  ;;  %v1214_v57 = vpop.f32.mrf.mxu0 }
 0x173   :  { %v994_v58 = vadd.f32 %v973_v50, %v3762_v49  ;;  %v3827_v46 = vadd.f32 %v1214_v57, %v992_v44 }
 0x174   :  { %v2719_v3 = vpop.f32.mrf.mxu1  ;;  %v2753_v2 = vpop.f32.mrf.mxu0 }
 0x176   :  { %v1219_v51 = vpop.f32.mrf.mxu0  ;;  %v1319_v20 = vpop.f32.mrf.mxu1 }
 0x177   :  { %v3829_v54 = vadd.f32 %v1219_v51, %v993_v19  ;;  %v1390_v62 = vadd.f32 %v1319_v20, %v3768_v52 }
 0x178   :  { %v2756_v23 = vpop.f32.mrf.mxu0  ;;  %v2762_v7 = vpop.f32.mrf.mxu1 }
 0x17a   :  { %v1222_v38 = vpop.f32.mrf.mxu0  ;;  %v1322_v28 = vpop.f32.mrf.mxu1 }
 0x17b   :  { %v3832_v15 = vadd.f32 %v1222_v38, %v994_v58  ;;  %v1391_v33 = vadd.f32 %v1322_v28, %v3776_v32 }
 0x17c   :  { %v2757_v31 = vpop.f32.mrf.mxu0  ;;  %v2763_v49 = vpop.f32.mrf.mxu1 }
 0x17e   :  { %v1327_v21 = vpop.f32.mrf.mxu1  ;;  %v1561_v24 = vpop.f32.mrf.mxu0 }
 0x17f   :  { %v1392_v9 = vadd.f32 %v1327_v21, %v3783_v29  ;;  %v3836_v10 = vadd.f32 %v1561_v24, %v1390_v62 }
 0x180   :  { %v2766_v5 = vpop.f32.mrf.mxu1  ;;  %v2800_v53 = vpop.f32.mrf.mxu0 }
 0x182   :  { %v1330_v39 = vpop.f32.mrf.mxu1  ;;  %v1564_v52 = vpop.f32.mrf.mxu0 }
 0x183   :  { %v1393_v43 = vadd.f32 %v1330_v39, %v3789_v35  ;;  %v3839_v8 = vadd.f32 %v1564_v52, %v1391_v33 }
 0x184   :  { %v2767_v26 = vpop.f32.mrf.mxu1  ;;  %v2801_v45 = vpop.f32.mrf.mxu0 }
 0x186   :  { %v1335_v27 = vpop.f32.mrf.mxu1  ;;  %v1569_v32 = vpop.f32.mrf.mxu0 }
 0x187   :  { %v1394_v59 = vadd.f32 %v1335_v27, %v3794_v63  ;;  %v3842_v14 = vadd.f32 %v1569_v32, %v1392_v9 }
 0x188   :  { %v2770_v61 = vpop.f32.mrf.mxu1  ;;  %v2804_v29 = vpop.f32.mrf.mxu0 }
 0x18a   :  { %v1338_v42 = vpop.f32.mrf.mxu1  ;;  %v1572_v41 = vpop.f32.mrf.mxu0 }
 0x18b   :  { %v1395_v4 = vadd.f32 %v1338_v42, %v3797_v48  ;;  %v3845_v37 = vadd.f32 %v1572_v41, %v1393_v43 }
 0x18c   :  { %v2771_v40 = vpop.f32.mrf.mxu1  ;;  %v2805_v35 = vpop.f32.mrf.mxu0 }
 0x18e   :  { %v1343_v12 = vpop.f32.mrf.mxu1  ;;  %v1577_v16 = vpop.f32.mrf.mxu0 }
 0x18f   :  { %v1396_v6 = vadd.f32 %v1343_v12, %v3800_v56  ;;  %v3848_v44 = vadd.f32 %v1577_v16, %v1394_v59 }
 0x190   :  { %v2774_v30 = vpop.f32.mrf.mxu1  ;;  %v2808_v63 = vpop.f32.mrf.mxu0 }
 0x192   :  { %v1346_v25 = vpop.f32.mrf.mxu1  ;;  %v1580_v0 = vpop.f32.mrf.mxu0 }
 0x193   :  { %v1397_v60 = vadd.f32 %v1346_v25, %v3803_v22  ;;  %v3851_v19 = vadd.f32 %v1580_v0, %v1395_v4 }
 0x194   :  { %v2775_v13 = vpop.f32.mrf.mxu1  ;;  %v2809_v48 = vpop.f32.mrf.mxu0 }
 0x196   :  { %v1351_v18 = vpop.f32.mrf.mxu1  ;;  %v1585_v50 = vpop.f32.mrf.mxu0 }
 0x197   :  { %v1398_v57 = vadd.f32 %v1351_v18, %v3806_v34  ;;  %v3854_v58 = vadd.f32 %v1585_v50, %v1396_v6 }
 0x198   :  { %v2778_v3 = vpop.f32.mrf.mxu1  ;;  %v2812_v56 = vpop.f32.mrf.mxu0 }
 0x19a   :  { %v1354_v2 = vpop.f32.mrf.mxu1  ;;  %v1588_v51 = vpop.f32.mrf.mxu0 }
 0x19b   :  { %v1399_v20 = vadd.f32 %v1354_v2, %v3809_v11  ;;  %v3857_v62 = vadd.f32 %v1588_v51, %v1397_v60 }
 0x19c   :  { %v2779_v23 = vpop.f32.mrf.mxu1  ;;  %v2813_v22 = vpop.f32.mrf.mxu0 }
 0x19e   :  { %v1359_v7 = vpop.f32.mrf.mxu1  ;;  %v1593_v38 = vpop.f32.mrf.mxu0 }
 0x19f   :  { %v1400_v28 = vadd.f32 %v1359_v7, %v3812_v36  ;;  %v3860_v33 = vadd.f32 %v1593_v38, %v1398_v57 }
 0x1a0   :  { %v2782_v31 = vpop.f32.mrf.mxu1  ;;  %v2816_v34 = vpop.f32.mrf.mxu0 }
 0x1a2   :  { %v1362_v49 = vpop.f32.mrf.mxu1  ;;  %v1596_v21 = vpop.f32.mrf.mxu0 }
 0x1a3   :  { %v1401_v24 = vadd.f32 %v1362_v49, %v3815_v47  ;;  %v3863_v9 = vadd.f32 %v1596_v21, %v1399_v20 }
 0x1a4   :  { %v2783_v5 = vpop.f32.mrf.mxu1  ;;  %v2817_v11 = vpop.f32.mrf.mxu0 }
 0x1a5   :  { %v3892_v11 = vld [vmem:[%s3933_s2] ss:$0 sm:$0xff]  ;;  %s2993_s2 = smov [#allocation3]  }
 0x1a6   :  { %v1367_v53 = vpop.f32.mrf.mxu1  ;;  %v1601_v39 = vpop.f32.mrf.mxu0  ;;  %s2236_s30 = sshll.u32 %s2993_s2, 4  ;;  %s2237_s30 = int_to_ptr.vmem [resolvable:$true] %s2236_s30 }
 0x1a7   :  { %v1402_v52 = vadd.f32 %v1367_v53, %v3818_v55  ;;  %v3866_v43 = vadd.f32 %v1601_v39, %v1400_v28  ;;  %s2969_s4 = scalar_lea.vmem %s2237_s30, 1152  ;;  %p2974_p1 = scmp.lt.s32.totalorder %s2237_s30, %s2237_s30 }
 0x1a8   :  { %v2786_v26 = vpop.f32.mrf.mxu1  ;;  %v2820_v36 = vpop.f32.mrf.mxu0  ;;  %p2970_p0 = scmp.ne.s32.totalorder %s2237_s30, %s2969_s4  ;;  %p2975_p2 = scmp.lt.s32.totalorder %s2969_s4, %s2969_s4 }
 0x1aa   :  { %v1370_v45 = vpop.f32.mrf.mxu1  ;;  %v1604_v27 = vpop.f32.mrf.mxu0  ;;  %p2976_p3 = por %p2975_p2, %p2974_p1 }
 0x1ab   :  { %v1403_v32 = vadd.f32 %v1370_v45, %v3821_v1  ;;  %v3869_v59 = vadd.f32 %v1604_v27, %v1401_v24 }
 0x1ac   :  { %v2787_v61 = vpop.f32.mrf.mxu1  ;;  %v2821_v47 = vpop.f32.mrf.mxu0  ;;  %p2977_p4 = pnand %p2976_p3, %p2970_p0 }
 0x1ae   :  { %v1375_v29 = vpop.f32.mrf.mxu1  ;;  %v1609_v42 = vpop.f32.mrf.mxu0 }
 0x1af   :  { %v1404_v41 = vadd.f32 %v1375_v29, %v3824_v17  ;;  %v3872_v4 = vadd.f32 %v1609_v42, %v1402_v52 }
 0x1b0   :  { %v2790_v40 = vpop.f32.mrf.mxu1  ;;  %v2824_v55 = vpop.f32.mrf.mxu0 }
 0x1b2   :  { %v1378_v35 = vpop.f32.mrf.mxu1  ;;  %v1612_v12 = vpop.f32.mrf.mxu0 }
 0x1b3   :  { %v1405_v16 = vadd.f32 %v1378_v35, %v3827_v46  ;;  %v3875_v6 = vadd.f32 %v1612_v12, %v1403_v32 }
 0x1b4   :  { %v2791_v30 = vpop.f32.mrf.mxu1  ;;  %v2825_v1 = vpop.f32.mrf.mxu0 }
 0x1b6   :  { %v1383_v63 = vpop.f32.mrf.mxu1  ;;  %v1617_v25 = vpop.f32.mrf.mxu0 }
 0x1b7   :  { %v1406_v0 = vadd.f32 %v1383_v63, %v3829_v54  ;;  %v3878_v60 = vadd.f32 %v1617_v25, %v1404_v41 }
 0x1b8   :  { %v2794_v13 = vpop.f32.mrf.mxu1  ;;  %v2828_v17 = vpop.f32.mrf.mxu0 }
 0x1ba   :  { %v1386_v48 = vpop.f32.mrf.mxu1  ;;  %v1620_v18 = vpop.f32.mrf.mxu0 }
 0x1bb   :  { %v1407_v50 = vadd.f32 %v1386_v48, %v3832_v15  ;;  %v3881_v57 = vadd.f32 %v1620_v18, %v1405_v16 }
 0x1bc   :  { %v2795_v3 = vpop.f32.mrf.mxu1  ;;  %v2829_v46 = vpop.f32.mrf.mxu0 }
 0x1be   :  { %v1625_v56 = vpop.f32.mrf.mxu0  ;;  %v1810_v2 = vpop.f32.mrf.mxu1 }
 0x1bf   :  { %v3883_v51 = vadd.f32 %v1625_v56, %v1406_v0  ;;  %v1881_v15 = vadd.f32 %v1810_v2, %v3836_v10 }
 0x1c0   :  { %v2832_v20 = vpop.f32.mrf.mxu0  ;;  %v2838_v23 = vpop.f32.mrf.mxu1 }
 0x1c2   :  { %v1628_v22 = vpop.f32.mrf.mxu0  ;;  %v1813_v54 = vpop.f32.mrf.mxu1 }
 0x1c3   :  { %v3885_v7 = vadd.f32 %v1628_v22, %v1407_v50  ;;  %v1882_v24 = vadd.f32 %v1813_v54, %v3839_v8 }
 0x1c4   :  { %v2833_v38 = vpop.f32.mrf.mxu0  ;;  %v2839_v28 = vpop.f32.mrf.mxu1 }
 0x1c6   :  { %v1818_v31 = vpop.f32.mrf.mxu1  ;;  %v1988_v34 = vpop.f32.mrf.mxu0 }
 0x1c7   :  { %v2059_v5 = vadd.f32 %v1988_v34, %v1881_v15  ;;  %v1883_v61 = vadd.f32 %v1818_v31, %v3842_v14 }
 0x1c8   :  { %v2842_v49 = vpop.f32.mrf.mxu1  ;;  %v2876_v21 = vpop.f32.mrf.mxu0 }
 0x1c9   :  { %v2123_v45 = vadd.f32 %v3892_v11, %v2059_v5 }
 0x1ca   :  { %v1821_v53 = vpop.f32.mrf.mxu1  ;;  %v1991_v39 = vpop.f32.mrf.mxu0 }
 0x1cb   :  { %v2060_v52 = vadd.f32 %v1991_v39, %v1882_v24  ;;  %v1884_v42 = vadd.f32 %v1821_v53, %v3845_v37 }
 0x1cc   :  { %v2843_v26 = vpop.f32.mrf.mxu1  ;;  %v2877_v36 = vpop.f32.mrf.mxu0 }
 0x1cd   :  { %v2124_v27 = vadd.f32 %v3892_v11, %v2060_v52 }
 0x1ce   :  { %v1826_v10 = vpop.f32.mrf.mxu1  ;;  %v1996_v32 = vpop.f32.mrf.mxu0 }
 0x1cf   :  { %v2428_v8 = vpack.c.bf16 %v2124_v27, %v2123_v45  ;;  %v2061_v41 = vadd.f32 %v1996_v32, %v1883_v61  ;;  %v1885_v14 = vadd.f32 %v1826_v10, %v3848_v44 }
 0x1d0   :  { %v2846_v47 = vpop.f32.mrf.mxu1  ;;  %v2880_v29 = vpop.f32.mrf.mxu0 }
 0x1d1   :  { %2429 = vst [vmem:[#allocation3] sm:$0xff] %v2428_v8   ;;  %v2125_v30 = vadd.f32 %v3892_v11, %v2061_v41 }
 0x1d2   :  { %v1829_v40 = vpop.f32.mrf.mxu1  ;;  %v1999_v55 = vpop.f32.mrf.mxu0 }
 0x1d3   :  { %v2062_v35 = vadd.f32 %v1999_v55, %v1884_v42  ;;  %v1886_v37 = vadd.f32 %v1829_v40, %v3851_v19 }
 0x1d4   :  { %v2847_v12 = vpop.f32.mrf.mxu1  ;;  %v2881_v16 = vpop.f32.mrf.mxu0 }
 0x1d5   :  { %v2126_v1 = vadd.f32 %v3892_v11, %v2062_v35 }
 0x1d6   :  { %v1834_v63 = vpop.f32.mrf.mxu1  ;;  %v2004_v25 = vpop.f32.mrf.mxu0 }
 0x1d7   :  { %v2433_v0 = vpack.c.bf16 %v2126_v1, %v2125_v30  ;;  %v2063_v48 = vadd.f32 %v2004_v25, %v1885_v14  ;;  %v1887_v44 = vadd.f32 %v1834_v63, %v3854_v58 }
 0x1d8   :  { %v2850_v13 = vpop.f32.mrf.mxu1  ;;  %v2884_v17 = vpop.f32.mrf.mxu0 }
 0x1d9   :  { %2470 = vst [vmem:[#allocation3 + $0x8] sm:$0xff] %v2433_v0   ;;  %v2127_v2 = vadd.f32 %v3892_v11, %v2063_v48 }
 0x1da   :  { %v1837_v18 = vpop.f32.mrf.mxu1  ;;  %v2007_v50 = vpop.f32.mrf.mxu0 }
 0x1db   :  { %v2064_v3 = vadd.f32 %v2007_v50, %v1886_v37  ;;  %v1888_v19 = vadd.f32 %v1837_v18, %v3857_v62 }
 0x1dc   :  { %v2851_v46 = vpop.f32.mrf.mxu1  ;;  %v2885_v56 = vpop.f32.mrf.mxu0 }
 0x1dd   :  { %v2128_v20 = vadd.f32 %v3892_v11, %v2064_v3 }
 0x1de   :  { %v1842_v23 = vpop.f32.mrf.mxu1  ;;  %v2012_v22 = vpop.f32.mrf.mxu0 }
 0x1df   :  { %v2438_v54 = vpack.c.bf16 %v2128_v20, %v2127_v2  ;;  %v2065_v31 = vadd.f32 %v2012_v22, %v1887_v44  ;;  %v1889_v58 = vadd.f32 %v1842_v23, %v3860_v33 }
 0x1e0   :  { %v2854_v38 = vpop.f32.mrf.mxu1  ;;  %v2888_v28 = vpop.f32.mrf.mxu0 }
 0x1e1   :  { %2471 = vst [vmem:[#allocation3 + $0x10] sm:$0xff] %v2438_v54   ;;  %v2129_v5 = vadd.f32 %v3892_v11, %v2065_v31 }
 0x1e2   :  { %v1845_v34 = vpop.f32.mrf.mxu1  ;;  %v2015_v15 = vpop.f32.mrf.mxu0 }
 0x1e3   :  { %v2066_v49 = vadd.f32 %v2015_v15, %v1888_v19  ;;  %v1890_v62 = vadd.f32 %v1845_v34, %v3863_v9 }
 0x1e4   :  { %v2855_v21 = vpop.f32.mrf.mxu1  ;;  %v2889_v24 = vpop.f32.mrf.mxu0 }
 0x1e5   :  { %v2130_v53 = vadd.f32 %v3892_v11, %v2066_v49 }
 0x1e6   :  { %v1850_v39 = vpop.f32.mrf.mxu1  ;;  %v2020_v52 = vpop.f32.mrf.mxu0 }
 0x1e7   :  { %v2443_v26 = vpack.c.bf16 %v2130_v53, %v2129_v5  ;;  %v2067_v27 = vadd.f32 %v2020_v52, %v1889_v58  ;;  %v1891_v33 = vadd.f32 %v1850_v39, %v3866_v43 }
 0x1e8   :  { %v2858_v36 = vpop.f32.mrf.mxu1  ;;  %v2892_v45 = vpop.f32.mrf.mxu0 }
 0x1e9   :  { %2472 = vst [vmem:[#allocation3 + $0x18] sm:$0xff] %v2443_v26   ;;  %v2131_v29 = vadd.f32 %v3892_v11, %v2067_v27 }
 0x1ea   :  { %v1853_v10 = vpop.f32.mrf.mxu1  ;;  %v2023_v32 = vpop.f32.mrf.mxu0 }
 0x1eb   :  { %v2068_v61 = vadd.f32 %v2023_v32, %v1890_v62  ;;  %v1892_v9 = vadd.f32 %v1853_v10, %v3869_v59 }
 0x1ec   :  { %v2859_v8 = vpop.f32.mrf.mxu1  ;;  %v2893_v47 = vpop.f32.mrf.mxu0 }
 0x1ed   :  { %v2132_v42 = vadd.f32 %v3892_v11, %v2068_v61 }
 0x1ee   :  { %v1858_v41 = vpop.f32.mrf.mxu1  ;;  %v2028_v40 = vpop.f32.mrf.mxu0 }
 0x1ef   :  { %v2448_v55 = vpack.c.bf16 %v2132_v42, %v2131_v29  ;;  %v2069_v16 = vadd.f32 %v2028_v40, %v1891_v33  ;;  %v1893_v43 = vadd.f32 %v1858_v41, %v3872_v4 }
 0x1f0   :  { %v2862_v35 = vpop.f32.mrf.mxu1  ;;  %v2896_v12 = vpop.f32.mrf.mxu0 }
 0x1f1   :  { %2473 = vst [vmem:[#allocation3 + $0x20] sm:$0xff] %v2448_v55   ;;  %v2133_v0 = vadd.f32 %v3892_v11, %v2069_v16 }
 0x1f2   :  { %v1861_v30 = vpop.f32.mrf.mxu1  ;;  %v2031_v1 = vpop.f32.mrf.mxu0 }
 0x1f3   :  { %v2070_v63 = vadd.f32 %v2031_v1, %v1892_v9  ;;  %v1894_v59 = vadd.f32 %v1861_v30, %v3875_v6 }
 0x1f4   :  { %v2863_v25 = vpop.f32.mrf.mxu1  ;;  %v2897_v14 = vpop.f32.mrf.mxu0 }
 0x1f5   :  { %v2134_v13 = vadd.f32 %v3892_v11, %v2070_v63 }
 0x1f6   :  { %v1866_v17 = vpop.f32.mrf.mxu1  ;;  %v2036_v37 = vpop.f32.mrf.mxu0 }
 0x1f7   :  { %v2453_v48 = vpack.c.bf16 %v2134_v13, %v2133_v0  ;;  %v2071_v3 = vadd.f32 %v2036_v37, %v1893_v43  ;;  %v1895_v4 = vadd.f32 %v1866_v17, %v3878_v60 }
 0x1f8   :  { %v2866_v18 = vpop.f32.mrf.mxu1  ;;  %v2900_v50 = vpop.f32.mrf.mxu0 }
 0x1f9   :  { %2474 = vst [vmem:[#allocation3 + $0x28] sm:$0xff] %v2453_v48   ;;  %v2135_v22 = vadd.f32 %v3892_v11, %v2071_v3 }
 0x1fa   :  { %v1869_v46 = vpop.f32.mrf.mxu1  ;;  %v2039_v56 = vpop.f32.mrf.mxu0 }
 0x1fb   :  { %v2072_v2 = vadd.f32 %v2039_v56, %v1894_v59  ;;  %v1896_v6 = vadd.f32 %v1869_v46, %v3881_v57 }
 0x1fc   :  { %v2867_v20 = vpop.f32.mrf.mxu1  ;;  %v2901_v23 = vpop.f32.mrf.mxu0 }
 0x1fd   :  { %v2136_v44 = vadd.f32 %v3892_v11, %v2072_v2 }
 0x1fe   :  { %v1874_v54 = vpop.f32.mrf.mxu1  ;;  %v2044_v38 = vpop.f32.mrf.mxu0 }
 0x1ff   :  { %v2458_v28 = vpack.c.bf16 %v2136_v44, %v2135_v22  ;;  %v2073_v34 = vadd.f32 %v2044_v38, %v1895_v4  ;;  %v1897_v53 = vadd.f32 %v1874_v54, %v3883_v51 }
 0x200   :  { %v2870_v19 = vpop.f32.mrf.mxu1  ;;  %v2904_v31 = vpop.f32.mrf.mxu0 }
 0x201   :  { %2475 = vst [vmem:[#allocation3 + $0x30] sm:$0xff] %v2458_v28   ;;  %v2137_v39 = vadd.f32 %v3892_v11, %v2073_v34 }
 0x202   :  { %v1877_v15 = vpop.f32.mrf.mxu1  ;;  %v2047_v49 = vpop.f32.mrf.mxu0 }
 0x203   :  { %v2074_v21 = vadd.f32 %v2047_v49, %v1896_v6  ;;  %v1898_v45 = vadd.f32 %v1877_v15, %v3885_v7 }
 0x204   :  { %v2905_v24 = vpop.f32.mrf.mxu0  ;;  %v2871_v5 = vpop.f32.mrf.mxu1 }
 0x205   :  { %v2138_v52 = vadd.f32 %v3892_v11, %v2074_v21 }
 0x206   :  { %v2052_v58 = vpop.f32.mrf.mxu0 }
 0x207   :  { %v2463_v60 = vpack.c.bf16 %v2138_v52, %v2137_v39  ;;  %v2075_v26 = vadd.f32 %v2052_v58, %v1897_v53 }
 0x208   :  { %v2908_v36 = vpop.f32.mrf.mxu0 }
 0x209   :  { %2476 = vst [vmem:[#allocation3 + $0x38] sm:$0xff] %v2463_v60   ;;  %v2139_v57 = vadd.f32 %v3892_v11, %v2075_v26 }
 0x20a   :  { %v2055_v62 = vpop.f32.mrf.mxu0 }
 0x20b   :  { %v2076_v27 = vadd.f32 %v2055_v62, %v1898_v45 }
 0x20c   :  { %v2909_v10 = vpop.f32.mrf.mxu0 }
 0x20d   :  { %v2140_v51 = vadd.f32 %v3892_v11, %v2076_v27 }
 0x20f   :  { %v2468_v32 = vpack.c.bf16 %v2140_v51, %v2139_v57 }
 0x211   :  { %2477 = vst [vmem:[#allocation3 + $0x40] sm:$0xff] %v2468_v32  }
 0x212   :  { %2980 = shalt.err (!%p2977_p4)
}
 0x213   :  { %s2994_s5 = smov 64   ;;  %s2995_s6 = smov 4  }
 0x214   :  { %2242 = dma.vmem_to_hbm [thread:$0]  %s2237_s30, 1152, %s3934_s3, [#allocation4], %s2994_s5, %s2994_s5, %s2995_s6  }
 0x215   :  { %2989 = dma.done.wait [#allocation4], 1152  }
 0x216   :  { %2990 = vsyncadd [#allocation4], 4294966144 }
 0x217   :  { %2246 = vsyncpa [#allocation4], 1 }

</bundles_post_ra>
